<compile_context>
chip_gen: v7x
topology: tpu7x:2x2x1
jax: 0.10.0
libtpu: 0.0.40
codegen_flags: <defaults>
</compile_context>

<pallas_src>
import jax
import jax.numpy as jnp
from jax.experimental import pallas as pl
from jax.experimental.pallas import tpu as pltpu

# Safe on all of v5e/v6e (128 MiB physical) and v7x (64 MiB physical).
_VMEM_LIMIT_BYTES = 48 * 1024 * 1024
_SQRT_2_OVER_PI = 0.7978845608028654
_LN_EPS = 1e-5


# ----------------------------------------------------------------------------
# Small helpers (shared by kernel wrappers and the pure-JAX reference)
# ----------------------------------------------------------------------------
def _gelu_tanh(x):
    # TODO(synk): PyTorch nn.GELU default is the exact erf form; tanh approximation
    # is used here so the activation stays on the TPU EUP (tanh) path.
    return 0.5 * x * (1.0 + jnp.tanh(_SQRT_2_OVER_PI * (x + 0.044715 * (x * x * x))))


def layer_norm(x, gamma, beta, eps=_LN_EPS):
    mu = jnp.mean(x, axis=-1, keepdims=True)
    xc = x - mu
    var = jnp.mean(xc * xc, axis=-1, keepdims=True)
    return xc * jax.lax.rsqrt(var + eps) * gamma + beta


def window_partition_j(x, ws):
    B, H, W, C = x.shape
    x = x.reshape(B, H // ws, ws, W // ws, ws, C)
    return x.transpose(0, 1, 3, 2, 4, 5).reshape(-1, ws, ws, C)


def window_reverse_j(windows, ws, H, W):
    B = windows.shape[0] // (H * W // ws // ws)
    x = windows.reshape(B, H // ws, W // ws, ws, ws, -1)
    return x.transpose(0, 1, 3, 2, 4, 5).reshape(B, H, W, -1)


def make_attn_mask(Hp, Wp, window_size, shift_size):
    """Standard Swin SW-MSA additive mask, shape (nW, N, N) with 0 / -100."""
    img_mask = jnp.zeros((1, Hp, Wp, 1), jnp.float32)
    h_slices = (slice(0, -window_size), slice(-window_size, -shift_size),
                slice(-shift_size, None))
    w_slices = (slice(0, -window_size), slice(-window_size, -shift_size),
                slice(-shift_size, None))
    cnt = 0
    for hs in h_slices:
        for ws_ in w_slices:
            img_mask = img_mask.at[:, hs, ws_, :].set(float(cnt))
            cnt += 1
    mask_windows = window_partition_j(img_mask, window_size)
    mask_windows = mask_windows.reshape(-1, window_size * window_size)
    attn_mask = mask_windows[:, None, :] - mask_windows[:, :, None]
    return jnp.where(attn_mask != 0, -100.0, 0.0).astype(jnp.float32)


def build_relative_position_index(window_size):
    Wh, Ww = window_size
    coords = jnp.stack(jnp.meshgrid(jnp.arange(Wh), jnp.arange(Ww), indexing="ij"))
    coords_flatten = coords.reshape(2, -1)
    rel = coords_flatten[:, :, None] - coords_flatten[:, None, :]
    rel = rel.transpose(1, 2, 0)
    rel = rel.at[:, :, 0].add(Wh - 1)
    rel = rel.at[:, :, 1].add(Ww - 1)
    rel = rel.at[:, :, 0].multiply(2 * Ww - 1)
    return rel.sum(-1)                                               # (N, N)


def gather_relative_position_bias(table, index, window_size, num_heads):
    N = window_size[0] * window_size[1]
    bias = table[index.reshape(-1)].reshape(N, N, num_heads)
    return bias.transpose(2, 0, 1).astype(jnp.float32)               # (H, N, N)


# ----------------------------------------------------------------------------
# Tile-size selection
# ----------------------------------------------------------------------------
def _pick_window_tile(B_, N, nW=None, target_rows=512):
    """Windows per grid step: divides B_, keeps the sublane dim a multiple of 8,
    is compatible with the mask's b_ % nW indexing, targets ~target_rows rows,
    and prefers an even grid length >= 2 (v7x: 2 TensorCores per chip)."""
    cands = []
    for tb in range(1, B_ + 1):
        if B_ % tb:
            continue
        if (tb * N) % 8 != 0 and tb != B_:
            continue
        if nW is not None and (nW % tb != 0 and tb % nW != 0):
            continue
        cands.append(tb)
    fit = [t for t in cands if t * N <= target_rows]
    pool = fit if fit else [min(cands)]

    def score(tb):
        g = B_ // tb
        return (g >= 2, g % 2 == 0, tb)

    return max(pool, key=score)


def _pick_row_tile(rows, target_rows=512):
    cands = [t for t in range(1, rows + 1)
             if rows % t == 0 and (t % 8 == 0 or t == rows)]
    fit = [t for t in cands if t <= target_rows]
    pool = fit if fit else [min(cands)]

    def score(t):
        g = rows // t
        return (g >= 2, g % 2 == 0, t)

    return max(pool, key=score)


# ----------------------------------------------------------------------------
# Pallas kernel 1: window attention (W-MSA / SW-MSA)
# ----------------------------------------------------------------------------
def _make_window_attention_kernel(TB, N, C, nh, Rblk):
    hd = C // nh

    def kernel(x_ref, wqkv_ref, bqkv_ref, bias_ref, wproj_ref, bproj_ref,
               o_ref, acc_ref):
        # Fused QKV projection for the whole window batch (bf16 MXU, f32 acc).
        x2 = x_ref[...]                                              # (TB*N, C) bf16
        qkv = jnp.dot(x2, wqkv_ref[...],
                      preferred_element_type=jnp.float32)            # (TB*N, 3C)
        qkv = qkv + bqkv_ref[...]                                    # scale pre-folded into Q
        qkv = qkv.reshape(TB, N, 3 * C)                              # sublane split only

        bias = bias_ref[...]                                         # (Rblk, nh, N, N)

        for h in range(nh):                                          # static unroll (nh small)
            qh = qkv[:, :, h * hd:(h + 1) * hd].astype(jnp.bfloat16)           # (TB, N, hd)
            kh = qkv[:, :, C + h * hd:C + (h + 1) * hd].astype(jnp.bfloat16)
            vh = qkv[:, :, 2 * C + h * hd:2 * C + (h + 1) * hd].astype(jnp.bfloat16)

            # window-batched attention scores
            s = jnp.einsum("bnd,bmd->bnm", qh, kh,
                           preferred_element_type=jnp.float32)       # (TB, N, N)

            bh = bias[:, h]                                          # (Rblk, N, N)
            if Rblk == 1 or Rblk == TB:
                s = s + bh                                           # broadcasts when Rblk == 1
            else:                                                    # TB = rep * Rblk
                rep = TB // Rblk
                s = (s.reshape(rep, Rblk, N, N) + bh[None]).reshape(TB, N, N)

            # numerically-stable softmax; approx reciprocal runs on the EUP slot
            s = s - jnp.max(s, axis=-1, keepdims=True)
            p = jnp.exp(s)
            p = p * pl.reciprocal(jnp.sum(p, axis=-1, keepdims=True), approx=True)

            oh = jnp.einsum("bnm,bmd->bnd", p.astype(jnp.bfloat16), vh,
                            preferred_element_type=jnp.float32)      # (TB, N, hd)
            # write this head's output into its column slice of the scratch slab
            # (no lane-axis concatenate, no live partial-head outputs)
            acc_ref[:, h * hd:(h + 1) * hd] = (
                oh.reshape(TB * N, hd).astype(jnp.bfloat16))

        # fused output projection for the whole window batch
        y = jnp.dot(acc_ref[...], wproj_ref[...],
                    preferred_element_type=jnp.float32) + bproj_ref[...]
        o_ref[...] = y.astype(o_ref.dtype)

    return kernel


def prepare_window_attention_params(p, num_heads, window_size):
    """One-time static transform of the attention parameters:
    fold the softmax scale into the Q weights/bias, gather the relative-position
    bias table, cast the resident matmul weights to bf16."""
    C = p["w_proj"].shape[0]
    scale = (C // num_heads) ** (-0.5)
    w_qkv = p["w_qkv"].at[:, :C].multiply(scale).astype(jnp.bfloat16)
    b_qkv = p["b_qkv"].at[:C].multiply(scale).reshape(1, -1).astype(jnp.float32)
    rel_bias = gather_relative_position_bias(
        p["rel_table"], p["rel_index"], (window_size, window_size), num_heads)
    w_proj = p["w_proj"].astype(jnp.bfloat16)
    b_proj = p["b_proj"].reshape(1, -1).astype(jnp.float32)
    return w_qkv, b_qkv, rel_bias, w_proj, b_proj


def window_attention(xw, w_qkv, b_qkv, rel_bias, w_proj, b_proj, num_heads, mask=None):
    """xw: (B_, N, C) windows; rel_bias: (H, N, N); mask: (nW, N, N) or None."""
    B_, N, C = xw.shape
    nh = num_heads
    assert C % nh == 0

    if mask is not None:
        nW = mask.shape[0]
        # pre-combine bias and mask once per (window-type, head) in the wrapper
        comb = (rel_bias[None, :, :, :] + mask[:, None, :, :]).astype(jnp.float32)
    else:
        nW = None
        comb = rel_bias[None].astype(jnp.float32)                    # (1, H, N, N)

    TB = _pick_window_tile(B_, N, nW)
    R_total = comb.shape[0]
    if R_total == 1:
        Rblk, comb_map = 1, (lambda b: (0, 0, 0, 0))
    elif R_total % TB == 0:
        ratio = R_total // TB
        Rblk, comb_map = TB, (lambda b: (b % ratio, 0, 0, 0))
    else:                                  # TB is a multiple of R_total (guaranteed)
        Rblk, comb_map = R_total, (lambda b: (0, 0, 0, 0))

    # lane-dense 2-D slab (TB*N rows x C lanes); input cast to bf16 for the MXU
    # TODO(synk): for C < 128 a further (B_, N*C) lane-folded presentation is possible.
    x2 = xw.reshape(B_ * N, C).astype(jnp.bfloat16)

    kernel = _make_window_attention_kernel(TB, N, C, nh, Rblk)
    out = pl.pallas_call(
        kernel,
        out_shape=jax.ShapeDtypeStruct((B_ * N, C), jnp.float32),
        grid=(B_ // TB,),
        in_specs=[
            pl.BlockSpec((TB * N, C), lambda b: (b, 0)),             # x windows
            pl.BlockSpec((C, 3 * C), lambda b: (0, 0)),              # qkv weight (bf16, resident)
            pl.BlockSpec((1, 3 * C), lambda b: (0, 0)),              # qkv bias
            pl.BlockSpec((Rblk, nh, N, N), comb_map),                # rel-bias (+ mask)
            pl.BlockSpec((C, C), lambda b: (0, 0)),                  # proj weight (bf16)
            pl.BlockSpec((1, C), lambda b: (0, 0)),                  # proj bias
        ],
        out_specs=pl.BlockSpec((TB * N, C), lambda b: (b, 0)),
        scratch_shapes=[pltpu.VMEM((TB * N, C), jnp.bfloat16)],
        compiler_params=pltpu.CompilerParams(
            dimension_semantics=("parallel",),
            vmem_limit_bytes=_VMEM_LIMIT_BYTES),
    )(x2, w_qkv, b_qkv, comb, w_proj, b_proj)
    return out.reshape(B_, N, C)


# ----------------------------------------------------------------------------
# Pallas kernel 2: fused norm2 + MLP + residual
# ----------------------------------------------------------------------------
def _make_mlp_kernel(eps):
    def kernel(x_ref, g_ref, b_ref, w1_ref, b1_ref, w2_ref, b2_ref, o_ref):
        x = x_ref[...]                                               # (TR, C) f32
        mu = jnp.mean(x, axis=-1, keepdims=True)
        xc = x - mu
        var = jnp.mean(xc * xc, axis=-1, keepdims=True)
        xn = xc * jax.lax.rsqrt(var + eps) * g_ref[...] + b_ref[...]
        h = jnp.dot(xn.astype(jnp.bfloat16), w1_ref[...],
                    preferred_element_type=jnp.float32) + b1_ref[...]
        h = _gelu_tanh(h)
        y = jnp.dot(h.astype(jnp.bfloat16), w2_ref[...],
                    preferred_element_type=jnp.float32) + b2_ref[...]
        o_ref[...] = (x + y).astype(o_ref.dtype)                     # fused residual
    return kernel


def mlp_residual(x, gamma, beta, w1, b1, w2, b2):
    """Computes x + fc2(gelu(fc1(LayerNorm(x)))) with one Pallas kernel."""
    B, L, C = x.shape
    hidden = w1.shape[1]
    rows = B * L
    TR = _pick_row_tile(rows)
    x2 = x.reshape(rows, C)
    out = pl.pallas_call(
        _make_mlp_kernel(_LN_EPS),
        out_shape=jax.ShapeDtypeStruct((rows, C), x.dtype),
        grid=(rows // TR,),
        in_specs=[
            pl.BlockSpec((TR, C), lambda i: (i, 0)),
            pl.BlockSpec((1, C), lambda i: (0, 0)),
            pl.BlockSpec((1, C), lambda i: (0, 0)),
            pl.BlockSpec((C, hidden), lambda i: (0, 0)),
            pl.BlockSpec((1, hidden), lambda i: (0, 0)),
            pl.BlockSpec((hidden, C), lambda i: (0, 0)),
            pl.BlockSpec((1, C), lambda i: (0, 0)),
        ],
        out_specs=pl.BlockSpec((TR, C), lambda i: (i, 0)),
        compiler_params=pltpu.CompilerParams(
            dimension_semantics=("parallel",),
            vmem_limit_bytes=_VMEM_LIMIT_BYTES),
    )(x2,
      gamma.reshape(1, -1).astype(jnp.float32),
      beta.reshape(1, -1).astype(jnp.float32),
      w1.astype(jnp.bfloat16), b1.reshape(1, -1).astype(jnp.float32),
      w2.astype(jnp.bfloat16), b2.reshape(1, -1).astype(jnp.float32))
    return out.reshape(B, L, C)


# ----------------------------------------------------------------------------
# Full SwinTransformerBlock forward (Pallas kernels + plain-JAX layout glue)
# ----------------------------------------------------------------------------
def swin_block_forward(x, p, H, W, num_heads, window_size, shift_size):
    B, L, C = x.shape
    assert L == H * W, "input feature has wrong size"
    shortcut = x

    # norm1 (cheap per-token glue; applied before padding to match PyTorch exactly)
    xn = layer_norm(x, p["ln1_g"], p["ln1_b"]).reshape(B, H, W, C)

    # pad / cyclic shift / window partition — pure layout, kept in plain JAX
    pad_r = (window_size - W % window_size) % window_size
    pad_b = (window_size - H % window_size) % window_size
    if pad_r or pad_b:
        xn = jnp.pad(xn, ((0, 0), (0, pad_b), (0, pad_r), (0, 0)))
    Hp, Wp = H + pad_b, W + pad_r
    if shift_size > 0:
        shifted = jnp.roll(xn, (-shift_size, -shift_size), axis=(1, 2))
        attn_mask = make_attn_mask(Hp, Wp, window_size, shift_size)
    else:
        shifted = xn
        attn_mask = None
    xw = window_partition_j(shifted, window_size)
    xw = xw.reshape(-1, window_size * window_size, C)

    # W-MSA / SW-MSA (Pallas kernel)
    attn_params = prepare_window_attention_params(p, num_heads, window_size)
    aw = window_attention(xw, *attn_params, num_heads=num_heads, mask=attn_mask)

    # window reverse / un-shift / un-pad
    aw = aw.reshape(-1, window_size, window_size, C)
    shifted = window_reverse_j(aw, window_size, Hp, Wp)
    xo = jnp.roll(shifted, (shift_size, shift_size), axis=(1, 2)) if shift_size > 0 else shifted
    xo = xo[:, :H, :W, :].reshape(B, L, C)

    # residual 1 (drop_path == identity), then fused norm2 + MLP + residual 2
    x1 = shortcut + xo
    return mlp_residual(x1, p["ln2_g"], p["ln2_b"], p["w1"], p["b1"], p["w2"], p["b2"])


# ----------------------------------------------------------------------------
# Pure-JAX reference (mirrors the PyTorch forward; tanh-GELU to match the kernel)
# ----------------------------------------------------------------------------
def reference_swin_block(x, p, H, W, num_heads, window_size, shift_size):
    B, L, C = x.shape
    hd = C // num_heads
    scale = hd ** (-0.5)
    shortcut = x
    xn = layer_norm(x, p["ln1_g"], p["ln1_b"]).reshape(B, H, W, C)
    pad_r = (window_size - W % window_size) % window_size
    pad_b = (window_size - H % window_size) % window_size
    if pad_r or pad_b:
        xn = jnp.pad(xn, ((0, 0), (0, pad_b), (0, pad_r), (0, 0)))
    Hp, Wp = H + pad_b, W + pad_r
    if shift_size > 0:
        shifted = jnp.roll(xn, (-shift_size, -shift_size), axis=(1, 2))
        mask = make_attn_mask(Hp, Wp, window_size, shift_size)
    else:
        shifted = xn
        mask = None
    xw = window_partition_j(shifted, window_size).reshape(-1, window_size * window_size, C)
    B_, N, _ = xw.shape

    qkv = (xw @ p["w_qkv"] + p["b_qkv"]).reshape(B_, N, 3, num_heads, hd)
    qkv = qkv.transpose(2, 0, 3, 1, 4)
    q, k, v = qkv[0] * scale, qkv[1], qkv[2]
    attn = jnp.einsum("bhnd,bhmd->bhnm", q, k)
    rel_bias = gather_relative_position_bias(
        p["rel_table"], p["rel_index"], (window_size, window_size), num_heads)
    attn = attn + rel_bias[None]
    if mask is not None:
        nW = mask.shape[0]
        attn = attn.reshape(B_ // nW, nW, num_heads, N, N) + mask[None, :, None]
        attn = attn.reshape(B_, num_heads, N, N)
    attn = jax.nn.softmax(attn, axis=-1)
    ow = jnp.einsum("bhnm,bhmd->bhnd", attn, v).transpose(0, 2, 1, 3).reshape(B_, N, C)
    ow = ow @ p["w_proj"] + p["b_proj"]

    ow = ow.reshape(-1, window_size, window_size, C)
    shifted = window_reverse_j(ow, window_size, Hp, Wp)
    xo = jnp.roll(shifted, (shift_size, shift_size), axis=(1, 2)) if shift_size > 0 else shifted
    xo = xo[:, :H, :W, :].reshape(B, L, C)
    x1 = shortcut + xo
    xn2 = layer_norm(x1, p["ln2_g"], p["ln2_b"])
    h = _gelu_tanh(xn2 @ p["w1"] + p["b1"])
    return x1 + (h @ p["w2"] + p["b2"])


# ----------------------------------------------------------------------------
# Demo
# ----------------------------------------------------------------------------
if __name__ == "__main__":
    B, H_img, W_img, C = 2, 8, 8, 32
    num_heads, window_size, shift_size = 4, 4, 2
    mlp_ratio = 4.0
    L = H_img * W_img
    hidden = int(C * mlp_ratio)

    key = jax.random.PRNGKey(0)
    ks = jax.random.split(key, 14)
    x = jax.random.normal(ks[0], (B, L, C), dtype=jnp.float32)

    # Weights stored as (in_features, out_features), i.e. transposed vs nn.Linear.
    params = {
        # TODO(synk): trunc_normal_(std=0.02) approximated with a plain normal.
        "rel_table": 0.02 * jax.random.normal(
            ks[1], ((2 * window_size - 1) * (2 * window_size - 1), num_heads), jnp.float32),
        "rel_index": build_relative_position_index((window_size, window_size)),
        "w_qkv": 0.05 * jax.random.normal(ks[2], (C, 3 * C), jnp.float32),
        "b_qkv": 0.05 * jax.random.normal(ks[3], (3 * C,), jnp.float32),
        "w_proj": 0.05 * jax.random.normal(ks[4], (C, C), jnp.float32),
        "b_proj": 0.05 * jax.random.normal(ks[5], (C,), jnp.float32),
        "ln1_g": 1.0 + 0.05 * jax.random.normal(ks[6], (C,), jnp.float32),
        "ln1_b": 0.05 * jax.random.normal(ks[7], (C,), jnp.float32),
        "ln2_g": 1.0 + 0.05 * jax.random.normal(ks[8], (C,), jnp.float32),
        "ln2_b": 0.05 * jax.random.normal(ks[9], (C,), jnp.float32),
        "w1": 0.05 * jax.random.normal(ks[10], (C, hidden), jnp.float32),
        "b1": 0.05 * jax.random.normal(ks[11], (hidden,), jnp.float32),
        "w2": 0.05 * jax.random.normal(ks[12], (hidden, C), jnp.float32),
        "b2": 0.05 * jax.random.normal(ks[13], (C,), jnp.float32),
    }

    # --- shifted-window path (SW-MSA, masked attention) ---
    out_sw = swin_block_forward(x, params, H=H_img, W=W_img, num_heads=num_heads,
                                window_size=window_size, shift_size=shift_size)
    out_sw = jax.block_until_ready(out_sw)
    ref_sw = reference_swin_block(x, params, H=H_img, W=W_img, num_heads=num_heads,
                                  window_size=window_size, shift_size=shift_size)
    assert out_sw.shape == (B, L, C)
    assert jnp.allclose(out_sw, ref_sw, atol=3e-2, rtol=3e-2), \
        float(jnp.max(jnp.abs(out_sw - ref_sw)))

    # --- non-shifted path (W-MSA, no mask) ---
    out_w = swin_block_forward(x, params, H=H_img, W=W_img, num_heads=num_heads,
                               window_size=window_size, shift_size=0)
    out_w = jax.block_until_ready(out_w)
    ref_w = reference_swin_block(x, params, H=H_img, W=W_img, num_heads=num_heads,
                                 window_size=window_size, shift_size=0)
    assert jnp.allclose(out_w, ref_w, atol=3e-2, rtol=3e-2), \
        float(jnp.max(jnp.abs(out_w - ref_w)))

    print("KERNEL_OK")
</pallas_src>

<mosaic_0001>
module attributes {stable_mosaic.version = 11 : i64} {
  func.func @kernel(%arg0: i32, %arg1: memref<64x32xbf16, #tpu.memory_space<vmem>>, %arg2: memref<32x96xbf16, #tpu.memory_space<vmem>>, %arg3: memref<1x96xf32, #tpu.memory_space<vmem>>, %arg4: memref<4x4x16x16xf32, #tpu.memory_space<vmem>>, %arg5: memref<32x32xbf16, #tpu.memory_space<vmem>>, %arg6: memref<1x32xf32, #tpu.memory_space<vmem>>, %arg7: memref<64x32xf32, #tpu.memory_space<vmem>>, %arg8: memref<64x32xbf16, #tpu.memory_space<vmem>>) attributes {dimension_semantics = [#tpu.dimension_semantics<parallel>], iteration_bounds = array<i64: 2>, scalar_prefetch = 0 : i64, scratch_operands = 1 : i64, tpu.core_type = #tpu.core_type<tc>, window_params = [{transform_indices = @transform_0, window_bounds = array<i64: 64, 32>}, {pipeline_mode = #tpu.pipeline_mode<synchronous>, transform_indices = @transform_1, window_bounds = array<i64: 32, 96>}, {pipeline_mode = #tpu.pipeline_mode<synchronous>, transform_indices = @transform_2, window_bounds = array<i64: 1, 96>}, {transform_indices = @transform_3, window_bounds = array<i64: 4, 4, 16, 16>}, {pipeline_mode = #tpu.pipeline_mode<synchronous>, transform_indices = @transform_4, window_bounds = array<i64: 32, 32>}, {pipeline_mode = #tpu.pipeline_mode<synchronous>, transform_indices = @transform_5, window_bounds = array<i64: 1, 32>}, {transform_indices = @transform_6, window_bounds = array<i64: 64, 32>}]} {
    %c0 = arith.constant 0 : index
    %c0_0 = arith.constant 0 : index
    %0 = vector.load %arg1[%c0, %c0_0] : memref<64x32xbf16, #tpu.memory_space<vmem>>, vector<64x32xbf16>
    %c0_1 = arith.constant 0 : index
    %c0_2 = arith.constant 0 : index
    %1 = vector.load %arg2[%c0_1, %c0_2] : memref<32x96xbf16, #tpu.memory_space<vmem>>, vector<32x96xbf16>
    %cst = arith.constant dense<0.000000e+00> : vector<64x96xf32>
    %2 = tpu.matmul %0, %1, %cst {dimension_numbers = #tpu.dot_dimension_numbers<[1], [0], [0], [1], [0, 0, 1, 1], [], []>} : vector<64x32xbf16>, vector<32x96xbf16>, vector<64x96xf32> -> vector<64x96xf32>
    %c0_3 = arith.constant 0 : index
    %c0_4 = arith.constant 0 : index
    %3 = vector.load %arg3[%c0_3, %c0_4] : memref<1x96xf32, #tpu.memory_space<vmem>>, vector<1x96xf32>
    %4 = vector.broadcast %3 : vector<1x96xf32> to vector<64x96xf32>
    %5 = arith.addf %2, %4 : vector<64x96xf32>
    %6 = vector.shape_cast %5 : vector<64x96xf32> to vector<4x16x96xf32>
    %c0_5 = arith.constant 0 : index
    %c0_6 = arith.constant 0 : index
    %c0_7 = arith.constant 0 : index
    %c0_8 = arith.constant 0 : index
    %7 = vector.load %arg4[%c0_5, %c0_6, %c0_7, %c0_8] : memref<4x4x16x16xf32, #tpu.memory_space<vmem>>, vector<4x4x16x16xf32>
    %8 = vector.extract_strided_slice %6 {offsets = [0, 0, 0], sizes = [4, 16, 8], strides = [1, 1, 1]} : vector<4x16x96xf32> to vector<4x16x8xf32>
    %9 = arith.truncf %8 : vector<4x16x8xf32> to vector<4x16x8xbf16>
    %10 = vector.extract_strided_slice %6 {offsets = [0, 0, 32], sizes = [4, 16, 8], strides = [1, 1, 1]} : vector<4x16x96xf32> to vector<4x16x8xf32>
    %11 = arith.truncf %10 : vector<4x16x8xf32> to vector<4x16x8xbf16>
    %12 = vector.extract_strided_slice %6 {offsets = [0, 0, 64], sizes = [4, 16, 8], strides = [1, 1, 1]} : vector<4x16x96xf32> to vector<4x16x8xf32>
    %13 = arith.truncf %12 : vector<4x16x8xf32> to vector<4x16x8xbf16>
    "tpu.trace_start"() <{level = 10 : i32, message = "bnd,bmd->bnm"}> : () -> ()
    %cst_9 = arith.constant dense<0.000000e+00> : vector<4x16x16xf32>
    %14 = tpu.matmul %9, %11, %cst_9 {dimension_numbers = #tpu.dot_dimension_numbers<[2], [2], [1], [1], [0, 0, 0, 1, 1, 1], [0], [0]>} : vector<4x16x8xbf16>, vector<4x16x8xbf16>, vector<4x16x16xf32> -> vector<4x16x16xf32>
    "tpu.trace_stop"() : () -> ()
    %15 = vector.extract_strided_slice %7 {offsets = [0, 0, 0, 0], sizes = [4, 1, 16, 16], strides = [1, 1, 1, 1]} : vector<4x4x16x16xf32> to vector<4x1x16x16xf32>
    %16 = vector.shape_cast %15 : vector<4x1x16x16xf32> to vector<4x16x16xf32>
    %17 = arith.addf %14, %16 : vector<4x16x16xf32>
    %cst_10 = arith.constant dense<0xFF800000> : vector<4x16xf32>
    %18 = vector.multi_reduction <maximumf>, %17, %cst_10 [2] : vector<4x16x16xf32> to vector<4x16xf32>
    %19 = vector.shape_cast %18 : vector<4x16xf32> to vector<4x16x1xf32>
    %20 = vector.broadcast %19 : vector<4x16x1xf32> to vector<4x16x16xf32>
    %21 = arith.subf %17, %20 : vector<4x16x16xf32>
    %22 = math.exp %21 : vector<4x16x16xf32>
    %cst_11 = arith.constant dense<0.000000e+00> : vector<4x16xf32>
    %23 = vector.multi_reduction <add>, %22, %cst_11 [2] : vector<4x16x16xf32> to vector<4x16xf32>
    %24 = vector.shape_cast %23 : vector<4x16xf32> to vector<4x16x1xf32>
    %25 = tpu.reciprocal %24 {approx = true} : vector<4x16x1xf32> -> vector<4x16x1xf32>
    %26 = vector.broadcast %25 : vector<4x16x1xf32> to vector<4x16x16xf32>
    %27 = arith.mulf %22, %26 : vector<4x16x16xf32>
    %28 = arith.truncf %27 : vector<4x16x16xf32> to vector<4x16x16xbf16>
    "tpu.trace_start"() <{level = 10 : i32, message = "bnm,bmd->bnd"}> : () -> ()
    %cst_12 = arith.constant dense<0.000000e+00> : vector<4x16x8xf32>
    %29 = tpu.matmul %28, %13, %cst_12 {dimension_numbers = #tpu.dot_dimension_numbers<[2], [1], [1], [2], [0, 0, 0, 1, 1, 2], [0], [0]>} : vector<4x16x16xbf16>, vector<4x16x8xbf16>, vector<4x16x8xf32> -> vector<4x16x8xf32>
    "tpu.trace_stop"() : () -> ()
    %30 = vector.shape_cast %29 : vector<4x16x8xf32> to vector<64x8xf32>
    %31 = arith.truncf %30 : vector<64x8xf32> to vector<64x8xbf16>
    %c0_13 = arith.constant 0 : index
    %c0_14 = arith.constant 0 : index
    %32 = vector.load %arg8[%c0_13, %c0_14] : memref<64x32xbf16, #tpu.memory_space<vmem>>, vector<64x8xbf16>
    tpu.vector_store %arg8[%c0_13, %c0_14], %31 {strides = array<i32>} : memref<64x32xbf16, #tpu.memory_space<vmem>>, vector<64x8xbf16>,
    %33 = vector.extract_strided_slice %6 {offsets = [0, 0, 8], sizes = [4, 16, 8], strides = [1, 1, 1]} : vector<4x16x96xf32> to vector<4x16x8xf32>
    %34 = arith.truncf %33 : vector<4x16x8xf32> to vector<4x16x8xbf16>
    %35 = vector.extract_strided_slice %6 {offsets = [0, 0, 40], sizes = [4, 16, 8], strides = [1, 1, 1]} : vector<4x16x96xf32> to vector<4x16x8xf32>
    %36 = arith.truncf %35 : vector<4x16x8xf32> to vector<4x16x8xbf16>
    %37 = vector.extract_strided_slice %6 {offsets = [0, 0, 72], sizes = [4, 16, 8], strides = [1, 1, 1]} : vector<4x16x96xf32> to vector<4x16x8xf32>
    %38 = arith.truncf %37 : vector<4x16x8xf32> to vector<4x16x8xbf16>
    "tpu.trace_start"() <{level = 10 : i32, message = "bnd,bmd->bnm"}> : () -> ()
    %cst_15 = arith.constant dense<0.000000e+00> : vector<4x16x16xf32>
    %39 = tpu.matmul %34, %36, %cst_15 {dimension_numbers = #tpu.dot_dimension_numbers<[2], [2], [1], [1], [0, 0, 0, 1, 1, 1], [0], [0]>} : vector<4x16x8xbf16>, vector<4x16x8xbf16>, vector<4x16x16xf32> -> vector<4x16x16xf32>
    "tpu.trace_stop"() : () -> ()
    %40 = vector.extract_strided_slice %7 {offsets = [0, 1, 0, 0], sizes = [4, 1, 16, 16], strides = [1, 1, 1, 1]} : vector<4x4x16x16xf32> to vector<4x1x16x16xf32>
    %41 = vector.shape_cast %40 : vector<4x1x16x16xf32> to vector<4x16x16xf32>
    %42 = arith.addf %39, %41 : vector<4x16x16xf32>
    %cst_16 = arith.constant dense<0xFF800000> : vector<4x16xf32>
    %43 = vector.multi_reduction <maximumf>, %42, %cst_16 [2] : vector<4x16x16xf32> to vector<4x16xf32>
    %44 = vector.shape_cast %43 : vector<4x16xf32> to vector<4x16x1xf32>
    %45 = vector.broadcast %44 : vector<4x16x1xf32> to vector<4x16x16xf32>
    %46 = arith.subf %42, %45 : vector<4x16x16xf32>
    %47 = math.exp %46 : vector<4x16x16xf32>
    %cst_17 = arith.constant dense<0.000000e+00> : vector<4x16xf32>
    %48 = vector.multi_reduction <add>, %47, %cst_17 [2] : vector<4x16x16xf32> to vector<4x16xf32>
    %49 = vector.shape_cast %48 : vector<4x16xf32> to vector<4x16x1xf32>
    %50 = tpu.reciprocal %49 {approx = true} : vector<4x16x1xf32> -> vector<4x16x1xf32>
    %51 = vector.broadcast %50 : vector<4x16x1xf32> to vector<4x16x16xf32>
    %52 = arith.mulf %47, %51 : vector<4x16x16xf32>
    %53 = arith.truncf %52 : vector<4x16x16xf32> to vector<4x16x16xbf16>
    "tpu.trace_start"() <{level = 10 : i32, message = "bnm,bmd->bnd"}> : () -> ()
    %cst_18 = arith.constant dense<0.000000e+00> : vector<4x16x8xf32>
    %54 = tpu.matmul %53, %38, %cst_18 {dimension_numbers = #tpu.dot_dimension_numbers<[2], [1], [1], [2], [0, 0, 0, 1, 1, 2], [0], [0]>} : vector<4x16x16xbf16>, vector<4x16x8xbf16>, vector<4x16x8xf32> -> vector<4x16x8xf32>
    "tpu.trace_stop"() : () -> ()
    %55 = vector.shape_cast %54 : vector<4x16x8xf32> to vector<64x8xf32>
    %56 = arith.truncf %55 : vector<64x8xf32> to vector<64x8xbf16>
    %c0_19 = arith.constant 0 : index
    %c8 = arith.constant 8 : index
    %57 = vector.load %arg8[%c0_19, %c8] : memref<64x32xbf16, #tpu.memory_space<vmem>>, vector<64x8xbf16>
    tpu.vector_store %arg8[%c0_19, %c8], %56 {strides = array<i32>} : memref<64x32xbf16, #tpu.memory_space<vmem>>, vector<64x8xbf16>,
    %58 = vector.extract_strided_slice %6 {offsets = [0, 0, 16], sizes = [4, 16, 8], strides = [1, 1, 1]} : vector<4x16x96xf32> to vector<4x16x8xf32>
    %59 = arith.truncf %58 : vector<4x16x8xf32> to vector<4x16x8xbf16>
    %60 = vector.extract_strided_slice %6 {offsets = [0, 0, 48], sizes = [4, 16, 8], strides = [1, 1, 1]} : vector<4x16x96xf32> to vector<4x16x8xf32>
    %61 = arith.truncf %60 : vector<4x16x8xf32> to vector<4x16x8xbf16>
    %62 = vector.extract_strided_slice %6 {offsets = [0, 0, 80], sizes = [4, 16, 8], strides = [1, 1, 1]} : vector<4x16x96xf32> to vector<4x16x8xf32>
    %63 = arith.truncf %62 : vector<4x16x8xf32> to vector<4x16x8xbf16>
    "tpu.trace_start"() <{level = 10 : i32, message = "bnd,bmd->bnm"}> : () -> ()
    %cst_20 = arith.constant dense<0.000000e+00> : vector<4x16x16xf32>
    %64 = tpu.matmul %59, %61, %cst_20 {dimension_numbers = #tpu.dot_dimension_numbers<[2], [2], [1], [1], [0, 0, 0, 1, 1, 1], [0], [0]>} : vector<4x16x8xbf16>, vector<4x16x8xbf16>, vector<4x16x16xf32> -> vector<4x16x16xf32>
    "tpu.trace_stop"() : () -> ()
    %65 = vector.extract_strided_slice %7 {offsets = [0, 2, 0, 0], sizes = [4, 1, 16, 16], strides = [1, 1, 1, 1]} : vector<4x4x16x16xf32> to vector<4x1x16x16xf32>
    %66 = vector.shape_cast %65 : vector<4x1x16x16xf32> to vector<4x16x16xf32>
    %67 = arith.addf %64, %66 : vector<4x16x16xf32>
    %cst_21 = arith.constant dense<0xFF800000> : vector<4x16xf32>
    %68 = vector.multi_reduction <maximumf>, %67, %cst_21 [2] : vector<4x16x16xf32> to vector<4x16xf32>
    %69 = vector.shape_cast %68 : vector<4x16xf32> to vector<4x16x1xf32>
    %70 = vector.broadcast %69 : vector<4x16x1xf32> to vector<4x16x16xf32>
    %71 = arith.subf %67, %70 : vector<4x16x16xf32>
    %72 = math.exp %71 : vector<4x16x16xf32>
    %cst_22 = arith.constant dense<0.000000e+00> : vector<4x16xf32>
    %73 = vector.multi_reduction <add>, %72, %cst_22 [2] : vector<4x16x16xf32> to vector<4x16xf32>
    %74 = vector.shape_cast %73 : vector<4x16xf32> to vector<4x16x1xf32>
    %75 = tpu.reciprocal %74 {approx = true} : vector<4x16x1xf32> -> vector<4x16x1xf32>
    %76 = vector.broadcast %75 : vector<4x16x1xf32> to vector<4x16x16xf32>
    %77 = arith.mulf %72, %76 : vector<4x16x16xf32>
    %78 = arith.truncf %77 : vector<4x16x16xf32> to vector<4x16x16xbf16>
    "tpu.trace_start"() <{level = 10 : i32, message = "bnm,bmd->bnd"}> : () -> ()
    %cst_23 = arith.constant dense<0.000000e+00> : vector<4x16x8xf32>
    %79 = tpu.matmul %78, %63, %cst_23 {dimension_numbers = #tpu.dot_dimension_numbers<[2], [1], [1], [2], [0, 0, 0, 1, 1, 2], [0], [0]>} : vector<4x16x16xbf16>, vector<4x16x8xbf16>, vector<4x16x8xf32> -> vector<4x16x8xf32>
    "tpu.trace_stop"() : () -> ()
    %80 = vector.shape_cast %79 : vector<4x16x8xf32> to vector<64x8xf32>
    %81 = arith.truncf %80 : vector<64x8xf32> to vector<64x8xbf16>
    %c0_24 = arith.constant 0 : index
    %c16 = arith.constant 16 : index
    %82 = vector.load %arg8[%c0_24, %c16] : memref<64x32xbf16, #tpu.memory_space<vmem>>, vector<64x8xbf16>
    tpu.vector_store %arg8[%c0_24, %c16], %81 {strides = array<i32>} : memref<64x32xbf16, #tpu.memory_space<vmem>>, vector<64x8xbf16>,
    %83 = vector.extract_strided_slice %6 {offsets = [0, 0, 24], sizes = [4, 16, 8], strides = [1, 1, 1]} : vector<4x16x96xf32> to vector<4x16x8xf32>
    %84 = arith.truncf %83 : vector<4x16x8xf32> to vector<4x16x8xbf16>
    %85 = vector.extract_strided_slice %6 {offsets = [0, 0, 56], sizes = [4, 16, 8], strides = [1, 1, 1]} : vector<4x16x96xf32> to vector<4x16x8xf32>
    %86 = arith.truncf %85 : vector<4x16x8xf32> to vector<4x16x8xbf16>
    %87 = vector.extract_strided_slice %6 {offsets = [0, 0, 88], sizes = [4, 16, 8], strides = [1, 1, 1]} : vector<4x16x96xf32> to vector<4x16x8xf32>
    %88 = arith.truncf %87 : vector<4x16x8xf32> to vector<4x16x8xbf16>
    "tpu.trace_start"() <{level = 10 : i32, message = "bnd,bmd->bnm"}> : () -> ()
    %cst_25 = arith.constant dense<0.000000e+00> : vector<4x16x16xf32>
    %89 = tpu.matmul %84, %86, %cst_25 {dimension_numbers = #tpu.dot_dimension_numbers<[2], [2], [1], [1], [0, 0, 0, 1, 1, 1], [0], [0]>} : vector<4x16x8xbf16>, vector<4x16x8xbf16>, vector<4x16x16xf32> -> vector<4x16x16xf32>
    "tpu.trace_stop"() : () -> ()
    %90 = vector.extract_strided_slice %7 {offsets = [0, 3, 0, 0], sizes = [4, 1, 16, 16], strides = [1, 1, 1, 1]} : vector<4x4x16x16xf32> to vector<4x1x16x16xf32>
    %91 = vector.shape_cast %90 : vector<4x1x16x16xf32> to vector<4x16x16xf32>
    %92 = arith.addf %89, %91 : vector<4x16x16xf32>
    %cst_26 = arith.constant dense<0xFF800000> : vector<4x16xf32>
    %93 = vector.multi_reduction <maximumf>, %92, %cst_26 [2] : vector<4x16x16xf32> to vector<4x16xf32>
    %94 = vector.shape_cast %93 : vector<4x16xf32> to vector<4x16x1xf32>
    %95 = vector.broadcast %94 : vector<4x16x1xf32> to vector<4x16x16xf32>
    %96 = arith.subf %92, %95 : vector<4x16x16xf32>
    %97 = math.exp %96 : vector<4x16x16xf32>
    %cst_27 = arith.constant dense<0.000000e+00> : vector<4x16xf32>
    %98 = vector.multi_reduction <add>, %97, %cst_27 [2] : vector<4x16x16xf32> to vector<4x16xf32>
    %99 = vector.shape_cast %98 : vector<4x16xf32> to vector<4x16x1xf32>
    %100 = tpu.reciprocal %99 {approx = true} : vector<4x16x1xf32> -> vector<4x16x1xf32>
    %101 = vector.broadcast %100 : vector<4x16x1xf32> to vector<4x16x16xf32>
    %102 = arith.mulf %97, %101 : vector<4x16x16xf32>
    %103 = arith.truncf %102 : vector<4x16x16xf32> to vector<4x16x16xbf16>
    "tpu.trace_start"() <{level = 10 : i32, message = "bnm,bmd->bnd"}> : () -> ()
    %cst_28 = arith.constant dense<0.000000e+00> : vector<4x16x8xf32>
    %104 = tpu.matmul %103, %88, %cst_28 {dimension_numbers = #tpu.dot_dimension_numbers<[2], [1], [1], [2], [0, 0, 0, 1, 1, 2], [0], [0]>} : vector<4x16x16xbf16>, vector<4x16x8xbf16>, vector<4x16x8xf32> -> vector<4x16x8xf32>
    "tpu.trace_stop"() : () -> ()
    %105 = vector.shape_cast %104 : vector<4x16x8xf32> to vector<64x8xf32>
    %106 = arith.truncf %105 : vector<64x8xf32> to vector<64x8xbf16>
    %c0_29 = arith.constant 0 : index
    %c24 = arith.constant 24 : index
    %107 = vector.load %arg8[%c0_29, %c24] : memref<64x32xbf16, #tpu.memory_space<vmem>>, vector<64x8xbf16>
    tpu.vector_store %arg8[%c0_29, %c24], %106 {strides = array<i32>} : memref<64x32xbf16, #tpu.memory_space<vmem>>, vector<64x8xbf16>,
    %c0_30 = arith.constant 0 : index
    %c0_31 = arith.constant 0 : index
    %108 = vector.load %arg8[%c0_30, %c0_31] : memref<64x32xbf16, #tpu.memory_space<vmem>>, vector<64x32xbf16>
    %c0_32 = arith.constant 0 : index
    %c0_33 = arith.constant 0 : index
    %109 = vector.load %arg5[%c0_32, %c0_33] : memref<32x32xbf16, #tpu.memory_space<vmem>>, vector<32x32xbf16>
    %cst_34 = arith.constant dense<0.000000e+00> : vector<64x32xf32>
    %110 = tpu.matmul %108, %109, %cst_34 {dimension_numbers = #tpu.dot_dimension_numbers<[1], [0], [0], [1], [0, 0, 1, 1], [], []>} : vector<64x32xbf16>, vector<32x32xbf16>, vector<64x32xf32> -> vector<64x32xf32>
    %c0_35 = arith.constant 0 : index
    %c0_36 = arith.constant 0 : index
    %111 = vector.load %arg6[%c0_35, %c0_36] : memref<1x32xf32, #tpu.memory_space<vmem>>, vector<1x32xf32>
    %112 = vector.broadcast %111 : vector<1x32xf32> to vector<64x32xf32>
    %113 = arith.addf %110, %112 : vector<64x32xf32>
    %c0_37 = arith.constant 0 : index
    %c0_38 = arith.constant 0 : index
    %114 = vector.load %arg7[%c0_37, %c0_38] : memref<64x32xf32, #tpu.memory_space<vmem>>, vector<64x32xf32>
    tpu.vector_store %arg7[%c0_37, %c0_38], %113 {strides = array<i32>} : memref<64x32xf32, #tpu.memory_space<vmem>>, vector<64x32xf32>,
    return
  }
  func.func @transform_0(%arg0: i32) -> (i32, i32) {
    %c0_i32 = arith.constant 0 : i32
    %c0_i32_0 = arith.constant 0 : i32
    return %arg0, %c0_i32 : i32, i32
  }
  func.func @transform_1(%arg0: i32) -> (i32, i32) {
    %c0_i32 = arith.constant 0 : i32
    %c0_i32_0 = arith.constant 0 : i32
    %c0_i32_1 = arith.constant 0 : i32
    return %c0_i32, %c0_i32_0 : i32, i32
  }
  func.func @transform_2(%arg0: i32) -> (i32, i32) {
    %c0_i32 = arith.constant 0 : i32
    %c0_i32_0 = arith.constant 0 : i32
    %c0_i32_1 = arith.constant 0 : i32
    return %c0_i32, %c0_i32_0 : i32, i32
  }
  func.func @transform_3(%arg0: i32) -> (i32, i32, i32, i32) {
    %c1_i32 = arith.constant 1 : i32
    %c0_i32 = arith.constant 0 : i32
    %0 = arith.cmpi eq, %c1_i32, %c0_i32 : i32
    %c1_i32_0 = arith.constant 1 : i32
    %1 = arith.select %0, %c1_i32_0, %c1_i32 : i32
    %2 = arith.remsi %arg0, %1 : i32
    %c0_i32_1 = arith.constant 0 : i32
    %3 = arith.cmpi ne, %2, %c0_i32_1 : i32
    %c0_i32_2 = arith.constant 0 : i32
    %4 = arith.cmpi slt, %2, %c0_i32_2 : i32
    %c0_i32_3 = arith.constant 0 : i32
    %5 = arith.cmpi slt, %1, %c0_i32_3 : i32
    %6 = arith.xori %4, %5 : i1
    %7 = arith.andi %6, %3 : i1
    %8 = arith.addi %2, %1 : i32
    %9 = arith.select %7, %8, %2 : i32
    %c0_i32_4 = arith.constant 0 : i32
    %c0_i32_5 = arith.constant 0 : i32
    %c0_i32_6 = arith.constant 0 : i32
    %c0_i32_7 = arith.constant 0 : i32
    return %9, %c0_i32_4, %c0_i32_5, %c0_i32_6 : i32, i32, i32, i32
  }
  func.func @transform_4(%arg0: i32) -> (i32, i32) {
    %c0_i32 = arith.constant 0 : i32
    %c0_i32_0 = arith.constant 0 : i32
    %c0_i32_1 = arith.constant 0 : i32
    return %c0_i32, %c0_i32_0 : i32, i32
  }
  func.func @transform_5(%arg0: i32) -> (i32, i32) {
    %c0_i32 = arith.constant 0 : i32
    %c0_i32_0 = arith.constant 0 : i32
    %c0_i32_1 = arith.constant 0 : i32
    return %c0_i32, %c0_i32_0 : i32, i32
  }
  func.func @transform_6(%arg0: i32) -> (i32, i32) {
    %c0_i32 = arith.constant 0 : i32
    %c0_i32_0 = arith.constant 0 : i32
    return %arg0, %c0_i32 : i32, i32
  }
}

</mosaic_0001>

<bundles_post_ra>
// kernel: tpu_custom_call.1
= control target key start
LH: loop header
LB: loop body
LE: loop exit
PB: predicated region body
PF: predicated region fallthrough
CT: control target
= control target key end

     0   :  { %11 = vsyncpa [#allocation4], 0  ;;  %s3259_s21 = smov 0   ;;  %s3780_s0 = inlined_call_operand.vmem [shape: bf16[128,32], index: 0, kind: input, shape index: {}]   ;;  %s3781_s1 = inlined_call_operand.vmem [shape: bf16[32,96], index: 1, kind: input, shape index: {}]   ;;  %s3782_s2 = inlined_call_operand.vmem [shape: f32[1,96], index: 2, kind: input, shape index: {}]   ;;  %s3783_s3 = inlined_call_operand.hbm [shape: f32[4,4,16,16], index: 3, kind: input, shape index: {}]   ;;  %s3784_s4 = inlined_call_operand.vmem [shape: bf16[32,32], index: 4, kind: input, shape index: {}]   ;;  %s3785_s5 = inlined_call_operand.vmem [shape: f32[1,32], index: 5, kind: input, shape index: {}]   ;;  %s3786_s6 = inlined_call_operand.vmem [shape: f32[128,32], index: 6, kind: output, shape index: {}]  }
   0x1 LB: > { %s2633_s22 = sadd.s32 4294967295, %s3203_s21   ;;  %p2635_p0 = scmp.ge.s32.totalorder %s3203_s21, 1  ;;  %s3203_s21 = sphi %s3259_s21, %s17_s21  }
   0x2   : > { %p179_p1 = scmp.lt.s32.totalorder %s3203_s21, 3  ;;  %s3205_s23 = smov [#allocation3]  }
   0x3   : > { %s197_s24 = sshll.u32 %s3205_s23, 4  ;;  %p3273_p3 = scmp.eq.s32.totalorder %s2633_s22, 0  ;;  %s198_s24 = int_to_ptr.vmem [resolvable:$true] %s197_s24 }
   0x4   : > { %p3267_p2 = pnand %p2635_p0, %p179_p1  ;;  %s3165_s30 = scalar_lea.hbm %s3783_s3, 4096 }
   0x5   : > { %s3791_s26 = scalar_select %p3273_p3, 1, 0 }
   0x6   : > { %s3790_s25 = scalar_select %p3267_p2, 1, 0 }
   0x7   : > { %p2996_p4 = pneg %p3267_p2  ;;  %p3166_p6 = scmp.ne.s32.totalorder %s3783_s3, %s3165_s30 }
   0x8   : > { %p3172_p10 = scmp.lt.u32.totalorder %s3165_s30, %s3783_s3 }
   0x9   : > { %p3281_p5 = pnand %p3273_p3, %p2996_p4 }
   0xb   : > { %p3167_p7 = pneg %p3281_p5 }
   0xd   : > { %p3168_p8 = pnand %p3167_p7, %p3166_p6 }
   0xf   : > { %p3169_p9 = pneg %p3168_p8 }
  0x11   : > { %p3174_p11 = pnand %p3172_p10, %p3169_p9 }
  0x13   : > { %3177 = shalt.err (!%p3174_p11)
}
  0x14   : > { %s3178_s11 = scalar_lea.vmem %s198_s24, 4096  ;;  %p3186_p1 = scmp.lt.s32.totalorder %s198_s24, %s198_s24 }
  0x15   : > { %p3179_p12 = scmp.ne.s32.totalorder %s198_s24, %s3178_s11  ;;  %p3187_p4 = scmp.lt.s32.totalorder %s3178_s11, %s3178_s11 }
  0x17   : > { %p3181_p13 = pnand %p3179_p12, %p3167_p7  ;;  %p3188_p3 = por %p3187_p4, %p3186_p1 }
  0x19   : > { %p3182_p0 = pneg %p3181_p13 }
  0x1b   : > { %p3189_p2 = pnand %p3188_p3, %p3182_p0 }
  0x1d   : > { %3192 = shalt.err (!%p3189_p2)
}
  0x1e   : > { %s3206_s12 = smov 128   ;;  %s3207_s13 = smov 8  }
  0x1f   : > { %2999 = dma.hbm_to_vmem [thread:$0]  (!%p3281_p5), %s3783_s3, 4096, %s198_s24, [#allocation4], %s3206_s12, %s3206_s12, %s3207_s13  }
  0x20   : > { %p3793_p6 = scmp.ne.s32.totalorder %s3790_s25, 0 }
  0x21   : > { %p3794_p8 = scmp.ne.s32.totalorder (!%p3793_p6), %s3791_s26, 0 }
  0x22   : > { %228 = sbr.rel (%p3793_p6) target bundleno = 3207 (0xc87), region = 44 }
  0x29   : > { %3198 = dma.done.wait (%p3794_p8), [#allocation4], 4096  }
  0x2a   : > { %3200 = vsyncadd (%p3794_p8), [#allocation4], 4294963200  ;;  %s2640_s16 = sshll.u32 %s2633_s22, 3  ;;  %v3029_v0 = vld [vmem:[%s3781_s1] sm:$0xff]   ;;  %v3030_v1 = vld [vmem:[%s3781_s1 + $0x8] sm:$0xff]   ;;  %vm322_vm0 = vcmask 261120  }
  0x2b   : > { %p259_p2 = scmp.lt.s32.totalorder %s2640_s16, 15  ;;  %2772 = vmatprep.subr.bf16.mxu0 %v3029_v0  ;;  %2988 = vmatprep.subr.bf16.mxu1 %v3029_v0  ;;  %v3208_v6 = vmov 0.0   ;;  %v2644_v8 = vld [vmem:[%s3782_s2] ss:$0 sm:$0xff]  ;;  %vm3209_vm1 = vmmov 0   ;;  %s3210_s28 = smov 96  }
  0x2c   : > { %2773 = vmatpush3.bf16.msra.mxu0 %v3029_v0  ;;  %2990 = vmatpush3.bf16.msra.mxu1 %v3029_v0  ;;  %vm439_vm2 = vcmask 64512   ;;  %v400_v36 = vld [vmem:[#allocation3] sm:$0xff]  ;;  %v401_v40 = vld [vmem:[#allocation3 + $0x8] sm:$0xff]  ;;  %vm637_vm3 = vcmask 130048   ;;  %s3211_s29 = smov 64   ;;  %s3212_s30 = smov 88  }
  0x2d   : > { %s3796_s16 = smov (!%p259_p2, %s2640_s16), 15  ;;  %2774 = vmatprep.subr.bf16.mxu0 %v3030_v1  ;;  %2989 = vmatprep.subr.bf16.mxu1 %v3030_v1  ;;  %v416_v37 = vld [vmem:[#allocation3 + $0x80] sm:$0xff]  ;;  %v409_v55 = vld [vmem:[#allocation3 + $0x48] sm:$0xff]  ;;  %s3213_s7 = smov 120   ;;  %vm1430_vm4 = vcmask 130112   ;;  %vm1939_vm5 = vcmask 195712  }
  0x2e   : > { %s2641_s17 = sshll.u32 %s3796_s16, 2  ;;  %v408_v52 = vld [vmem:[#allocation3 + $0x40] sm:$0xff]  ;;  %v417_v62 = vld [vmem:[#allocation3 + $0x88] sm:$0xff]  ;;  %s3214_s8 = smov 56   ;;  %vm2448_vm6 = vcmask 261312  }
  0x2f   : > { %s262_s20 = scalar_lea.vmem %s3780_s0, %s2641_s17  ;;  %v424_v63 = vld [vmem:[#allocation3 + $0xc0] sm:$0xff]  ;;  %s3215_s9 = smov 80  }
  0x30   : > { %v3031_v2 = vld [vmem:[%s262_s20] sm:$0xff]   ;;  %v3032_v3 = vld [vmem:[%s262_s20 + $0x10] sm:$0xff]   ;;  %v3033_v4 = vld [vmem:[%s262_s20 + $0x8] sm:$0xff]   ;;  %2775 = vmatpush3.bf16.msra.mxu0 %v3030_v1  ;;  %2991 = vmatpush3.bf16.msra.mxu1 %v3030_v1  ;;  %s3216_s10 = smov 112   ;;  %s3217_s11 = smov 48  }
  0x31   : > { %2776 = vmatprep.mubr.msk.bf16.mxu0 %vm322_vm0, %v3031_v2  ;;  %2780 = vmatprep.mubr.msk.bf16.mxu1 %vm322_vm0, %v3032_v3  ;;  %v3034_v5 = vld [vmem:[%s262_s20 + $0x18] sm:$0xff]   ;;  %v425_v3 = vld [vmem:[#allocation3 + $0xc8] sm:$0xff]  ;;  %s3218_s12 = smov 72   ;;  %s3219_s13 = smov 104  }
  0x32   : > { %2784 = vmatprep.subr.bf16.mxu1 %v3208_v6  ;;  %2796 = vmatprep.subr.bf16.mxu0 %v3208_v6  ;;  %s3220_s14 = smov 40   ;;  %s3221_s15 = smov 8  }
  0x33   : > { %2777 = vmatmul.mubr.msk.bf16.vlgmr.msra.gmra.mrb[0].mxu0 %vm322_vm0, %v3033_v4  ;;  %2781 = vmatmul.mubr.msk.bf16.vlgmr.msra.gmra.mrb[0].mxu1 %vm322_vm0, %v3034_v5  ;;  %s3222_s17 = smov 16   ;;  %s3223_s24 = smov 24  }
  0x34   : > { %2786 = vmatprep.mubr.msk.bf16.mxu1 %vm3209_vm1, %v3208_v6  ;;  %2798 = vmatprep.mubr.msk.bf16.mxu0 %vm3209_vm1, %v3208_v6  ;;  %s2643_s25 = sshll.u32 %s3796_s16, 3 }
 0x106   : > { %v2778_v7 = vpop.f32.mrb[0].mxu0  ;;  %v2782_v9 = vpop.f32.mrb[0].mxu1 }
 0x107   : > { %v394_v10 = vadd.f32 %v2782_v9, %v2644_v8  ;;  %v369_v11 = vpop.f32.mrb[1].mxu0  ;;  %v385_v12 = vpop.f32.mrb[1].mxu1  ;;  %v378_v16 = vadd.f32 %v2778_v7, %v2644_v8 }
 0x108   : > { %v386_v13 = vadd.f32 %v2644_v8, %v385_v12  ;;  %v2779_v14 = vpop.f32.mrb[2].mxu0  ;;  %v2783_v15 = vpop.f32.mrb[2].mxu1  ;;  %v370_v21 = vadd.f32 %v2644_v8, %v369_v11 }
 0x109   : > { %v381_v17 = vadd.f32 %v2779_v14, %v2644_v8  ;;  %v397_v18 = vadd.f32 %v2783_v15, %v2644_v8  ;;  %v372_v19 = vpop.f32.mrb[3].mxu0  ;;  %v388_v20 = vpop.f32.mrb[3].mxu1 }
 0x10a   : > { %v373_v22 = vadd.f32 %v2644_v8, %v372_v19  ;;  %v389_v23 = vadd.f32 %v2644_v8, %v388_v20 }
 0x10b   : > { %v3334_v24 = vpack.c.bf16 %v381_v17, %v378_v16  ;;  %v3336_v25 = vpack.c.bf16 %v397_v18, %v394_v10 }
 0x10c   : > { %v3338_v26 = vpack.c.bf16 %v373_v22, %v370_v21  ;;  %v3340_v27 = vpack.c.bf16 %v389_v23, %v386_v13 }
 0x10e   : > { %538 = vrot.lane.b32.xlu1 %v3340_v27, %s3210_s28  ;;  %437 = vrot.lane.b32.xlu0 %v3338_v26, %s3210_s28 }
 0x112   : > { %488 = vrot.lane.b32.xlu0 %v3334_v24, %s3210_s28  ;;  %588 = vrot.lane.b32.xlu1 %v3336_v25, %s3210_s28 }
 0x180   : > { %v539_v28 = vpop.permute.xlu1 %538  ;;  %v438_v29 = vpop.permute.xlu0 %437 }
 0x181   : > { %v544_v30 = vsel %vm439_vm2, %v539_v28, 0  ;;  %v444_v31 = vsel %vm439_vm2, %v438_v29, 0 }
 0x182   : > { %2785 = vmatpush3.bf16.xpose.msra.mxu1 %v444_v31  ;;  %2797 = vmatpush3.bf16.xpose.msra.mxu0 %v544_v30 }
 0x183   : > { %2790 = vmatprep.subr.bf16.mxu1 %v3208_v6  ;;  %2808 = vmatprep.subr.bf16.mxu0 %v3208_v6 }
 0x184   : > { %v489_v32 = vpop.permute.xlu0 %488  ;;  %v589_v34 = vpop.permute.xlu1 %588 }
 0x185   : > { %v494_v33 = vsel %vm439_vm2, %v489_v32, 0  ;;  %v594_v35 = vsel %vm439_vm2, %v589_v34, 0 }
 0x189   : > { %2787 = vmatmul.mubr.msk.bf16.vlgmr.msra.gmra.mrb[4].mxu1 %vm439_vm2, %v3338_v26  ;;  %2799 = vmatmul.mubr.msk.bf16.vlgmr.msra.gmra.mrb[4].mxu0 %vm439_vm2, %v3340_v27 }
 0x18a   : > { %2791 = vmatpush3.bf16.xpose.msra.mxu1 %v494_v33  ;;  %2792 = vmatprep.mubr.msk.bf16.mxu1 %vm3209_vm1, %v3208_v6 }
 0x18b   : > { %2802 = vmatprep.subr.bf16.mxu1 %v3208_v6  ;;  %2810 = vmatprep.mubr.msk.bf16.mxu0 %vm3209_vm1, %v3208_v6 }
 0x191   : > { %2793 = vmatmul.mubr.msk.bf16.vlgmr.msra.gmra.mrb[8].mxu1 %vm439_vm2, %v3334_v24 }
 0x192   : > { %2803 = vmatpush3.bf16.xpose.msra.mxu1 %v594_v35  ;;  %2804 = vmatprep.mubr.msk.bf16.mxu1 %vm3209_vm1, %v3208_v6 }
 0x193   : > { %2814 = vmatprep.subr.bf16.mxu1 %v3208_v6 }
 0x199   : > { %2805 = vmatmul.mubr.msk.bf16.vlgmr.msra.gmra.mrb[12].mxu1 %vm439_vm2, %v3336_v25 }
 0x19a   : > { %2816 = vmatprep.mubr.msk.bf16.mxu1 %vm3209_vm1, %v3208_v6 }
 0x25c   : > { %v480_v38 = vpop.f32.mrb[4].mxu1  ;;  %v580_v39 = vpop.f32.mrb[4].mxu0 }
 0x25d   : > { %v481_v41 = vadd.f32 %v480_v38, %v400_v36  ;;  %v581_v42 = vadd.f32 %v580_v39, %v416_v37  ;;  %v2788_v43 = vpop.f32.mrb[5].mxu1  ;;  %v2800_v44 = vpop.f32.mrb[5].mxu0 }
 0x25e   : > { %v483_v45 = vpop.f32.mrb[6].mxu1  ;;  %v583_v46 = vpop.f32.mrb[6].mxu0 }
 0x25f   : > { %v484_v47 = vadd.f32 %v483_v45, %v401_v40  ;;  %v2789_v48 = vpop.f32.mrb[7].mxu1  ;;  %v2801_v49 = vpop.f32.mrb[7].mxu0  ;;  %v650_v50 = vsel %vm637_vm3, %v581_v42, -inf  ;;  %v638_v51 = vsel %vm637_vm3, %v481_v41, -inf  ;;  %v584_v0 = vadd.f32 %v583_v46, %v417_v62 }
 0x260   : > { %651 = vmax.xlane.f32.xlu1 %v650_v50  ;;  %639 = vmax.xlane.f32.xlu0 %v638_v51 }
 0x261   : > { %v641_v53 = vsel %vm637_vm3, %v484_v47, -inf  ;;  %v653_v10 = vsel %vm637_vm3, %v584_v0, -inf }
 0x264   : > { %642 = vmax.xlane.f32.xlu1 %v641_v53  ;;  %v530_v54 = vpop.f32.mrb[8].mxu1 }
 0x265   : > { %v531_v56 = vadd.f32 %v530_v54, %v408_v52  ;;  %v2794_v57 = vpop.f32.mrb[9].mxu1 }
 0x266   : > { %v533_v58 = vpop.f32.mrb[10].mxu1 }
 0x267   : > { %v534_v59 = vadd.f32 %v533_v58, %v409_v55  ;;  %v2795_v60 = vpop.f32.mrb[11].mxu1  ;;  %v644_v61 = vsel %vm637_vm3, %v531_v56, -inf }
 0x268   : > { %645 = vmax.xlane.f32.xlu0 %v644_v61 }
 0x269   : > { %v647_v1 = vsel %vm637_vm3, %v534_v59, -inf }
 0x26c   : > { %648 = vmax.xlane.f32.xlu0 %v647_v1  ;;  %v630_v2 = vpop.f32.mrb[12].mxu1 }
 0x26d   : > { %v3375_v4 = vadd.f32 %v630_v2, %v424_v63  ;;  %v2806_v5 = vpop.f32.mrb[13].mxu1 }
 0x26e   : > { %v633_v7 = vpop.f32.mrb[14].mxu1 }
 0x26f   : > { %v3377_v8 = vadd.f32 %v633_v7, %v425_v3  ;;  %v2807_v9 = vpop.f32.mrb[15].mxu1  ;;  %v656_v11 = vsel %vm637_vm3, %v3375_v4, -inf }
 0x270   : > { %654 = vmax.xlane.f32.xlu0 %v653_v10  ;;  %657 = vmax.xlane.f32.xlu1 %v656_v11 }
 0x271   : > { %v659_v12 = vsel %vm637_vm3, %v3377_v8, -inf }
 0x274   : > { %660 = vmax.xlane.f32.xlu0 %v659_v12 }
 0x281   : > { %730 = vrot.lane.b32.xlu1 %v3338_v26, %s3211_s29 }
 0x2ed   : > { %v652_v13 = vpop.xlane.xlu1 %651  ;;  %v640_v14 = vpop.xlane.xlu0 %639 }
 0x2ee   : > { %v666_v15 = vsub.f32 %v581_v42, %v652_v13  ;;  %v662_v16 = vsub.f32 %v481_v41, %v640_v14 }
 0x2f0   : > { %v670_v17 = vmul.f32 1.442695, %v662_v16  ;;  %v678_v18 = vmul.f32 1.442695, %v666_v15 }
 0x2f1   : > { %v643_v19 = vpop.xlane.xlu1 %642 }
 0x2f2   : > { %v663_v20 = vsub.f32 %v484_v47, %v643_v19  ;;  %3037 = vpow2.f32 %v670_v17 }
 0x2f3   : > { %3039 = vpow2.f32 %v678_v18 }
 0x2f4   : > { %v672_v21 = vmul.f32 1.442695, %v663_v20 }
 0x2f5   : > { %v646_v22 = vpop.xlane.xlu0 %645 }
 0x2f6   : > { %3041 = vpow2.f32 %v672_v21  ;;  %v664_v23 = vsub.f32 %v531_v56, %v646_v22 }
 0x2f8   : > { %v674_v28 = vmul.f32 1.442695, %v664_v23 }
 0x2f9   : > { %v649_v29 = vpop.xlane.xlu0 %648 }
 0x2fa   : > { %3043 = vpow2.f32 %v674_v28  ;;  %v665_v31 = vsub.f32 %v534_v59, %v649_v29 }
 0x2fc   : > { %v3386_v30 = vpop.eup %3037  ;;  %v676_v39 = vmul.f32 1.442695, %v665_v31 }
 0x2fd   : > { %v658_v32 = vpop.xlane.xlu1 %657  ;;  %v655_v33 = vpop.xlane.xlu0 %654  ;;  %v686_v35 = vsel %vm637_vm3, %v3386_v30, 0.0 }
 0x2fe   : > { %v667_v34 = vsub.f32 %v584_v0, %v655_v33  ;;  %v3390_v36 = vpop.eup %3039  ;;  %687 = vadd.xlane.f32.xlu1 %v686_v35  ;;  %v668_v49 = vsub.f32 %v3375_v4, %v658_v32 }
 0x2ff   : > { %v698_v42 = vsel %vm637_vm3, %v3390_v36, 0.0 }
 0x300   : > { %v3042_v37 = vpop.eup %3041  ;;  %v680_v38 = vmul.f32 1.442695, %v667_v34  ;;  %v682_v50 = vmul.f32 1.442695, %v668_v49 }
 0x301   : > { %v731_v40 = vpop.permute.xlu1 %730  ;;  %v689_v41 = vsel %vm637_vm3, %v3042_v37, 0.0  ;;  %v661_v51 = vpop.xlane.xlu0 %660 }
 0x302   : > { %2809 = vmatpush3.bf16.msra.mxu0 %v731_v40  ;;  %690 = vadd.xlane.f32.xlu0 %v689_v41  ;;  %3045 = vpow2.f32 %v680_v38  ;;  %v669_v52 = vsub.f32 %v3377_v8, %v661_v51 }
 0x303   : > { %699 = vadd.xlane.f32.xlu1 %v698_v42  ;;  %2820 = vmatprep.subr.bf16.mxu0 %v3208_v6  ;;  %3047 = vpow2.f32 %v676_v39 }
 0x304   : > { %v3396_v43 = vpop.eup %3043  ;;  %3049 = vpow2.f32 %v682_v50  ;;  %v684_v53 = vmul.f32 1.442695, %v669_v52 }
 0x305   : > { %v692_v44 = vsel %vm637_vm3, %v3396_v43, 0.0 }
 0x306   : > { %3051 = vpow2.f32 %v684_v53 }
 0x307   : > { %693 = vadd.xlane.f32.xlu1 %v692_v44 }
 0x30c   : > { %v3046_v45 = vpop.eup %3045 }
 0x30d   : > { %v701_v46 = vsel %vm637_vm3, %v3046_v45, 0.0  ;;  %v3401_v47 = vpop.eup %3047 }
 0x30e   : > { %702 = vadd.xlane.f32.xlu0 %v701_v46  ;;  %v695_v48 = vsel %vm637_vm3, %v3401_v47, 0.0  ;;  %v3413_v54 = vpop.eup %3049 }
 0x30f   : > { %v704_v55 = vsel %vm637_vm3, %v3413_v54, 0.0 }
 0x310   : > { %v3417_v56 = vpop.eup %3051 }
 0x311   : > { %v707_v57 = vsel %vm637_vm3, %v3417_v56, 0.0 }
 0x312   : > { %696 = vadd.xlane.f32.xlu0 %v695_v48 }
 0x318   : > { %824 = vrot.lane.b32.xlu1 %v3340_v27, %s3211_s29 }
 0x31c   : > { %871 = vrot.lane.b32.xlu1 %v3336_v25, %s3211_s29 }
 0x328   : > { %777 = vrot.lane.b32.xlu0 %v3334_v24, %s3211_s29  ;;  %s268_s29 = scalar_lea.vmem %s3786_s6, %s2643_s25 }
 0x340   : > { %705 = vadd.xlane.f32.xlu1 %v704_v55 }
 0x347   : > { %708 = vadd.xlane.f32.xlu0 %v707_v57  ;;  %v402_v57 = vld [vmem:[#allocation3 + $0x10] sm:$0xff] }
 0x351   : > { %979 = vrot.lane.b32.xlu1 %v3334_v24, %s3212_s30 }
 0x355   : > { %1030 = vrot.lane.b32.xlu1 %v3340_v27, %s3212_s30 }
 0x359   : > { %1081 = vrot.lane.b32.xlu1 %v3336_v25, %s3212_s30 }
 0x35d   : > { %1079 = vrot.lane.b32.xlu1 %v3336_v25, %s3213_s7  ;;  %928 = vrot.lane.b32.xlu0 %v3338_v26, %s3212_s30 }
 0x361   : > { %926 = vrot.lane.b32.xlu0 %v3338_v26, %s3213_s7 }
 0x365   : > { %977 = vrot.lane.b32.xlu0 %v3334_v24, %s3213_s7 }
 0x369   : > { %1028 = vrot.lane.b32.xlu0 %v3340_v27, %s3213_s7 }
 0x38b   : > { %v688_v58 = vpop.xlane.xlu1 %687 }
 0x38c   : > { %3053 = vrcp.f32 %v688_v58 }
 0x38f   : > { %v691_v59 = vpop.xlane.xlu0 %690 }
 0x390   : > { %3055 = vrcp.f32 %v691_v59  ;;  %v700_v60 = vpop.xlane.xlu1 %699  ;;  %v403_v59 = vld [vmem:[#allocation3 + $0x18] sm:$0xff] }
 0x391   : > { %3057 = vrcp.f32 %v700_v60 }
 0x394   : > { %v694_v62 = vpop.xlane.xlu1 %693 }
 0x396   : > { %v3054_v61 = vpop.eup %3053 }
 0x397   : > { %v718_v0 = vmul.f32 %v3054_v61, %v3386_v30 }
 0x398   : > { %v825_v4 = vpop.permute.xlu1 %824 }
 0x39a   : > { %v3056_v63 = vpop.eup %3055 }
 0x39b   : > { %v719_v1 = vmul.f32 %v3056_v63, %v3042_v37  ;;  %v703_v2 = vpop.xlane.xlu0 %702  ;;  %v3058_v8 = vpop.eup %3057 }
 0x39c   : > { %3059 = vrcp.f32 %v703_v2  ;;  %v722_v10 = vmul.f32 %v3058_v8, %v3390_v36  ;;  %v872_v18 = vpop.permute.xlu1 %871 }
 0x39d   : > { %v726_v3 = vpack.c.bf16 %v719_v1, %v718_v0  ;;  %3061 = vrcp.f32 %v694_v62 }
 0x39f   : > { %2811 = vmatmul.mubr.msk.bf16.vlgmr.msra.gmra.mrb[8].mxu0 %vm637_vm3, %v726_v3  ;;  %v697_v5 = vpop.xlane.xlu0 %696 }
 0x3a0   : > { %2821 = vmatpush3.bf16.msra.mxu0 %v825_v4  ;;  %2822 = vmatprep.mubr.msk.bf16.mxu0 %vm3209_vm1, %v3208_v6  ;;  %3063 = vrcp.f32 %v697_v5 }
 0x3a1   : > { %2832 = vmatprep.subr.bf16.mxu0 %v3208_v6 }
 0x3a3   : > { %v778_v7 = vpop.permute.xlu0 %777 }
 0x3a4   : > { %2815 = vmatpush3.bf16.msra.mxu1 %v778_v7 }
 0x3a5   : > { %2826 = vmatprep.subr.bf16.mxu1 %v3208_v6 }
 0x3a6   : > { %v3060_v9 = vpop.eup %3059 }
 0x3a7   : > { %v723_v11 = vmul.f32 %v3060_v9, %v3046_v45  ;;  %v3062_v12 = vpop.eup %3061  ;;  %v418_v9 = vld [vmem:[#allocation3 + $0x90] sm:$0xff] }
 0x3a8   : > { %v720_v15 = vmul.f32 %v3062_v12, %v3396_v43 }
 0x3a9   : > { %v728_v13 = vpack.c.bf16 %v723_v11, %v722_v10 }
 0x3aa   : > { %v3064_v14 = vpop.eup %3063 }
 0x3ab   : > { %v721_v16 = vmul.f32 %v3064_v14, %v3401_v47  ;;  %2823 = vmatmul.mubr.msk.bf16.vlgmr.msra.gmra.mrb[12].mxu0 %vm637_vm3, %v728_v13  ;;  %v410_v13 = vld [vmem:[#allocation3 + $0x50] sm:$0xff] }
 0x3ac   : > { %2834 = vmatprep.mubr.msk.bf16.mxu0 %vm3209_vm1, %v3208_v6 }
 0x3ad   : > { %v727_v17 = vpack.c.bf16 %v721_v16, %v720_v15 }
 0x3af   : > { %2817 = vmatmul.mubr.msk.bf16.vlgmr.msra.gmra.mrb[16].mxu1 %vm637_vm3, %v727_v17 }
 0x3b0   : > { %2827 = vmatpush3.bf16.msra.mxu1 %v872_v18  ;;  %2828 = vmatprep.mubr.msk.bf16.mxu1 %vm3209_vm1, %v3208_v6  ;;  %v411_v18 = vld [vmem:[#allocation3 + $0x58] sm:$0xff] }
 0x3b1   : > { %2838 = vmatprep.subr.bf16.mxu1 %v3208_v6 }
 0x3cd   : > { %v706_v19 = vpop.xlane.xlu1 %705 }
 0x3ce   : > { %3065 = vrcp.f32 %v706_v19 }
 0x3d1   : > { %v980_v21 = vpop.permute.xlu1 %979 }
 0x3d2   : > { %v985_v37 = vsel %vm439_vm2, %v980_v21, 0 }
 0x3d4   : > { %v709_v20 = vpop.xlane.xlu0 %708 }
 0x3d5   : > { %3067 = vrcp.f32 %v709_v20  ;;  %v1031_v30 = vpop.permute.xlu1 %1030 }
 0x3d6   : > { %v1036_v34 = vsel %vm439_vm2, %v1031_v30, 0  ;;  %v426_v30 = vld [vmem:[#allocation3 + $0xd0] sm:$0xff] }
 0x3d8   : > { %v929_v22 = vpop.permute.xlu0 %928  ;;  %v3066_v29 = vpop.eup %3065 }
 0x3d9   : > { %v934_v23 = vsel %vm439_vm2, %v929_v22, 0  ;;  %v724_v32 = vmul.f32 %v3066_v29, %v3413_v54  ;;  %v1082_v39 = vpop.permute.xlu1 %1081  ;;  %v419_v29 = vld [vmem:[#allocation3 + $0x98] sm:$0xff] }
 0x3da   : > { %2833 = vmatpush3.bf16.xpose.msra.mxu0 %v934_v23  ;;  %v1087_v40 = vsel %vm439_vm2, %v1082_v39, 0 }
 0x3db   : > { %2844 = vmatprep.subr.bf16.mxu0 %v3208_v6 }
 0x3dc   : > { %v927_v28 = vpop.permute.xlu0 %926 }
 0x3dd   : > { %v1080_v41 = vpop.permute.xlu1 %1079 }
 0x3df   : > { %v3068_v31 = vpop.eup %3067 }
 0x3e0   : > { %v725_v33 = vmul.f32 %v3068_v31, %v3417_v56  ;;  %v978_v35 = vpop.permute.xlu0 %977 }
 0x3e1   : > { %2835 = vmatmul.mubr.msk.bf16.vlgmr.msra.gmra.mrb[16].mxu0 %vm439_vm2, %v927_v28 }
 0x3e2   : > { %2845 = vmatpush3.bf16.xpose.msra.mxu0 %v1036_v34  ;;  %v729_v36 = vpack.c.bf16 %v725_v33, %v724_v32  ;;  %2846 = vmatprep.mubr.msk.bf16.mxu0 %vm3209_vm1, %v3208_v6  ;;  %v427_v34 = vld [vmem:[#allocation3 + $0xd8] sm:$0xff] }
 0x3e3   : > { %2856 = vmatprep.subr.bf16.mxu0 %v3208_v6 }
 0x3e4   : > { %2829 = vmatmul.mubr.msk.bf16.vlgmr.msra.gmra.mrb[20].mxu1 %vm637_vm3, %v729_v36  ;;  %v1029_v38 = vpop.permute.xlu0 %1028 }
 0x3e5   : > { %2839 = vmatpush3.bf16.xpose.msra.mxu1 %v985_v37  ;;  %2840 = vmatprep.mubr.msk.bf16.mxu1 %vm3209_vm1, %v3208_v6 }
 0x3e6   : > { %2850 = vmatprep.subr.bf16.mxu1 %v3208_v6 }
 0x3e9   : > { %2847 = vmatmul.mubr.msk.bf16.vlgmr.msra.gmra.mrb[20].mxu0 %vm439_vm2, %v1029_v38 }
 0x3ea   : > { %2858 = vmatprep.mubr.msk.bf16.mxu0 %vm3209_vm1, %v3208_v6 }
 0x3ec   : > { %2841 = vmatmul.mubr.msk.bf16.vlgmr.msra.gmra.mrb[24].mxu1 %vm439_vm2, %v978_v35 }
 0x3ed   : > { %2851 = vmatpush3.bf16.xpose.msra.mxu1 %v1087_v40  ;;  %2852 = vmatprep.mubr.msk.bf16.mxu1 %vm3209_vm1, %v3208_v6 }
 0x3ee   : > { %2862 = vmatprep.subr.bf16.mxu1 %v3208_v6 }
 0x3f4   : > { %2853 = vmatmul.mubr.msk.bf16.vlgmr.msra.gmra.mrb[28].mxu1 %vm439_vm2, %v1080_v41 }
 0x3f5   : > { %2864 = vmatprep.mubr.msk.bf16.mxu1 %vm3209_vm1, %v3208_v6 }
 0x472   : > { %v770_v42 = vpop.f32.mrb[8].mxu0 }
 0x473   : > { %v2812_v43 = vpop.f32.mrb[9].mxu0 }
 0x474   : > { %v773_v44 = vpop.f32.mrb[10].mxu0 }
 0x475   : > { %v918_v45 = vpack.c.bf16 %v773_v44, %v770_v42  ;;  %v2813_v46 = vpop.f32.mrb[11].mxu0 }
 0x477   : > { %922 = vst.msk [vmem:[#allocation2] sm:$0xff] %vm439_vm2, %v918_v45 }
 0x47e   : > { %v864_v47 = vpop.f32.mrb[12].mxu0 }
 0x47f   : > { %v2824_v48 = vpop.f32.mrb[13].mxu0 }
 0x480   : > { %v867_v49 = vpop.f32.mrb[14].mxu0 }
 0x481   : > { %v920_v50 = vpack.c.bf16 %v867_v49, %v864_v47  ;;  %v2825_v51 = vpop.f32.mrb[15].mxu0 }
 0x482   : > { %v817_v52 = vpop.f32.mrb[16].mxu1 }
 0x483   : > { %924 = vst.msk [vmem:[#allocation2 + $0x10] sm:$0xff] %vm439_vm2, %v920_v50  ;;  %v2818_v53 = vpop.f32.mrb[17].mxu1 }
 0x484   : > { %v820_v54 = vpop.f32.mrb[18].mxu1 }
 0x485   : > { %v919_v55 = vpack.c.bf16 %v820_v54, %v817_v52  ;;  %v2819_v56 = vpop.f32.mrb[19].mxu1 }
 0x487   : > { %923 = vst.msk [vmem:[#allocation2 + $0x8] sm:$0xff] %vm439_vm2, %v919_v55 }
 0x4b4   : > { %v970_v58 = vpop.f32.mrb[16].mxu0 }
 0x4b5   : > { %v971_v60 = vadd.f32 %v970_v58, %v402_v57  ;;  %v2836_v61 = vpop.f32.mrb[17].mxu0 }
 0x4b6   : > { %v973_v62 = vpop.f32.mrb[18].mxu0 }
 0x4b7   : > { %v974_v63 = vadd.f32 %v973_v62, %v403_v59  ;;  %v911_v0 = vpop.f32.mrb[20].mxu1  ;;  %v2837_v1 = vpop.f32.mrb[19].mxu0  ;;  %v1130_v2 = vsel %vm637_vm3, %v971_v60, -inf }
 0x4b8   : > { %v2830_v3 = vpop.f32.mrb[21].mxu1  ;;  %1131 = vmax.xlane.f32.xlu0 %v1130_v2 }
 0x4b9   : > { %v914_v4 = vpop.f32.mrb[22].mxu1  ;;  %v1133_v5 = vsel %vm637_vm3, %v974_v63, -inf }
 0x4ba   : > { %v921_v7 = vpack.c.bf16 %v914_v4, %v911_v0  ;;  %v2831_v8 = vpop.f32.mrb[23].mxu1  ;;  %1134 = vmax.xlane.f32.xlu1 %v1133_v5 }
 0x4bc   : > { %925 = vst.msk [vmem:[#allocation2 + $0x18] sm:$0xff] %vm439_vm2, %v921_v7  ;;  %v1072_v10 = vpop.f32.mrb[20].mxu0 }
 0x4bd   : > { %v1073_v11 = vadd.f32 %v1072_v10, %v418_v9  ;;  %v2848_v12 = vpop.f32.mrb[21].mxu0 }
 0x4be   : > { %v1075_v14 = vpop.f32.mrb[22].mxu0 }
 0x4bf   : > { %v1021_v15 = vpop.f32.mrb[24].mxu1  ;;  %v2849_v16 = vpop.f32.mrb[23].mxu0  ;;  %v1142_v17 = vsel %vm637_vm3, %v1073_v11, -inf  ;;  %v1076_v31 = vadd.f32 %v1075_v14, %v419_v29 }
 0x4c0   : > { %v1022_v19 = vadd.f32 %v1021_v15, %v410_v13  ;;  %v2842_v20 = vpop.f32.mrb[25].mxu1  ;;  %1143 = vmax.xlane.f32.xlu1 %v1142_v17 }
 0x4c1   : > { %v1024_v21 = vpop.f32.mrb[26].mxu1  ;;  %v1145_v41 = vsel %vm637_vm3, %v1076_v31, -inf }
 0x4c2   : > { %v1025_v22 = vadd.f32 %v1024_v21, %v411_v18  ;;  %v2843_v23 = vpop.f32.mrb[27].mxu1  ;;  %v1136_v28 = vsel %vm637_vm3, %v1022_v19, -inf }
 0x4c3   : > { %1137 = vmax.xlane.f32.xlu0 %v1136_v28 }
 0x4c4   : > { %v1139_v32 = vsel %vm637_vm3, %v1025_v22, -inf }
 0x4c7   : > { %1140 = vmax.xlane.f32.xlu0 %v1139_v32  ;;  %v1123_v33 = vpop.f32.mrb[28].mxu1 }
 0x4c8   : > { %v1124_v35 = vadd.f32 %v1123_v33, %v426_v30  ;;  %v2854_v36 = vpop.f32.mrb[29].mxu1 }
 0x4c9   : > { %v1126_v37 = vpop.f32.mrb[30].mxu1 }
 0x4ca   : > { %v1127_v38 = vadd.f32 %v1126_v37, %v427_v34  ;;  %v2855_v39 = vpop.f32.mrb[31].mxu1  ;;  %v1148_v40 = vsel %vm637_vm3, %v1124_v35, -inf }
 0x4cb   : > { %1149 = vmax.xlane.f32.xlu1 %v1148_v40  ;;  %1146 = vmax.xlane.f32.xlu0 %v1145_v41 }
 0x4cc   : > { %v1151_v42 = vsel %vm637_vm3, %v1127_v38, -inf }
 0x4cf   : > { %1152 = vmax.xlane.f32.xlu0 %v1151_v42 }
 0x4dc   : > { %1222 = vrot.lane.b32.xlu1 %v3338_v26, %s3214_s8 }
 0x4e0   : > { %1316 = vrot.lane.b32.xlu1 %v3340_v27, %s3214_s8 }
 0x4e4   : > { %1363 = vrot.lane.b32.xlu1 %v3336_v25, %s3214_s8 }
 0x4e5   : > { %1269 = vrot.lane.b32.xlu0 %v3334_v24, %s3214_s8 }
 0x545   : > { %v1132_v43 = vpop.xlane.xlu0 %1131 }
 0x546   : > { %v1154_v44 = vsub.f32 %v971_v60, %v1132_v43 }
 0x547   : > { %v1135_v45 = vpop.xlane.xlu1 %1134 }
 0x548   : > { %v1162_v46 = vmul.f32 1.442695, %v1154_v44  ;;  %v1155_v47 = vsub.f32 %v974_v63, %v1135_v45 }
 0x54a   : > { %3069 = vpow2.f32 %v1162_v46  ;;  %v1164_v48 = vmul.f32 1.442695, %v1155_v47 }
 0x54c   : > { %3071 = vpow2.f32 %v1164_v48 }
 0x54d   : > { %v1144_v49 = vpop.xlane.xlu1 %1143 }
 0x54e   : > { %v1158_v50 = vsub.f32 %v1073_v11, %v1144_v49 }
 0x550   : > { %v1138_v51 = vpop.xlane.xlu0 %1137  ;;  %v1170_v53 = vmul.f32 1.442695, %v1158_v50 }
 0x551   : > { %v1156_v52 = vsub.f32 %v1022_v19, %v1138_v51 }
 0x553   : > { %v1166_v54 = vmul.f32 1.442695, %v1156_v52 }
 0x554   : > { %v3486_v55 = vpop.eup %3069  ;;  %v1141_v56 = vpop.xlane.xlu0 %1140 }
 0x555   : > { %3073 = vpow2.f32 %v1166_v54  ;;  %v1157_v57 = vsub.f32 %v1025_v22, %v1141_v56  ;;  %v1178_v58 = vsel %vm637_vm3, %v3486_v55, 0.0 }
 0x556   : > { %v3490_v59 = vpop.eup %3071  ;;  %1179 = vadd.xlane.f32.xlu1 %v1178_v58  ;;  %3075 = vpow2.f32 %v1170_v53 }
 0x557   : > { %v1168_v60 = vmul.f32 1.442695, %v1157_v57  ;;  %v1181_v61 = vsel %vm637_vm3, %v3490_v59, 0.0 }
 0x558   : > { %v1150_v62 = vpop.xlane.xlu1 %1149  ;;  %1182 = vadd.xlane.f32.xlu0 %v1181_v61  ;;  %v1147_v63 = vpop.xlane.xlu0 %1146 }
 0x559   : > { %3077 = vpow2.f32 %v1168_v60  ;;  %v1160_v0 = vsub.f32 %v1124_v35, %v1150_v62  ;;  %v1159_v1 = vsub.f32 %v1076_v31, %v1147_v63 }
 0x55b   : > { %v1174_v2 = vmul.f32 1.442695, %v1160_v0  ;;  %v1172_v3 = vmul.f32 1.442695, %v1159_v1 }
 0x55c   : > { %v1223_v4 = vpop.permute.xlu1 %1222  ;;  %v1153_v5 = vpop.xlane.xlu0 %1152 }
 0x55d   : > { %3079 = vpow2.f32 %v1174_v2  ;;  %v1161_v7 = vsub.f32 %v1127_v38, %v1153_v5  ;;  %2857 = vmatpush3.bf16.msra.mxu0 %v1223_v4 }
 0x55e   : > { %3081 = vpow2.f32 %v1172_v3  ;;  %2868 = vmatprep.subr.bf16.mxu0 %v3208_v6 }
 0x55f   : > { %v3074_v8 = vpop.eup %3073  ;;  %v1176_v9 = vmul.f32 1.442695, %v1161_v7 }
 0x560   : > { %v1270_v10 = vpop.permute.xlu0 %1269  ;;  %v1184_v11 = vsel %vm637_vm3, %v3074_v8, 0.0  ;;  %v3496_v12 = vpop.eup %3075 }
 0x561   : > { %3083 = vpow2.f32 %v1176_v9  ;;  %1185 = vadd.xlane.f32.xlu1 %v1184_v11  ;;  %2863 = vmatpush3.bf16.msra.mxu1 %v1270_v10  ;;  %v1190_v14 = vsel %vm637_vm3, %v3496_v12, 0.0  ;;  %v1317_v22 = vpop.permute.xlu1 %1316 }
 0x562   : > { %2874 = vmatprep.subr.bf16.mxu1 %v3208_v6 }
 0x563   : > { %v3078_v13 = vpop.eup %3077 }
 0x564   : > { %v1187_v15 = vsel %vm637_vm3, %v3078_v13, 0.0 }
 0x565   : > { %1191 = vadd.xlane.f32.xlu1 %v1190_v14  ;;  %1188 = vadd.xlane.f32.xlu0 %v1187_v15  ;;  %v1364_v23 = vpop.permute.xlu1 %1363 }
 0x567   : > { %v3502_v16 = vpop.eup %3079 }
 0x568   : > { %v3082_v17 = vpop.eup %3081  ;;  %v1196_v18 = vsel %vm637_vm3, %v3502_v16, 0.0 }
 0x569   : > { %1197 = vadd.xlane.f32.xlu1 %v1196_v18  ;;  %v1193_v19 = vsel %vm637_vm3, %v3082_v17, 0.0 }
 0x56a   : > { %1194 = vadd.xlane.f32.xlu0 %v1193_v19 }
 0x56b   : > { %v3084_v20 = vpop.eup %3083 }
 0x56c   : > { %v1199_v21 = vsel %vm637_vm3, %v3084_v20, 0.0 }
 0x56e   : > { %1200 = vadd.xlane.f32.xlu0 %v1199_v21 }
 0x57a   : > { %1488 = vrot.lane.b32.xlu1 %v3334_v24, %s3215_s9 }
 0x57e   : > { %1539 = vrot.lane.b32.xlu1 %v3340_v27, %s3215_s9 }
 0x582   : > { %1590 = vrot.lane.b32.xlu1 %v3336_v25, %s3215_s9 }
 0x584   : > { %1437 = vrot.lane.b32.xlu0 %v3338_v26, %s3215_s9 }
 0x586   : > { %1588 = vrot.lane.b32.xlu1 %v3336_v25, %s3216_s10 }
 0x588   : > { %1435 = vrot.lane.b32.xlu0 %v3338_v26, %s3216_s10 }
 0x58c   : > { %1486 = vrot.lane.b32.xlu0 %v3334_v24, %s3216_s10 }
 0x590   : > { %1537 = vrot.lane.b32.xlu0 %v3340_v27, %s3216_s10 }
 0x5e3   : > { %v1180_v28 = vpop.xlane.xlu1 %1179 }
 0x5e4   : > { %3085 = vrcp.f32 %v1180_v28 }
 0x5e5   : > { %v1183_v29 = vpop.xlane.xlu0 %1182 }
 0x5e6   : > { %3087 = vrcp.f32 %v1183_v29 }
 0x5ee   : > { %v3086_v30 = vpop.eup %3085  ;;  %v1186_v31 = vpop.xlane.xlu1 %1185 }
 0x5ef   : > { %v1210_v33 = vmul.f32 %v3086_v30, %v3486_v55  ;;  %3089 = vrcp.f32 %v1186_v31  ;;  %v405_v31 = vld [vmem:[#allocation3 + $0x28] sm:$0xff] }
 0x5f0   : > { %v3088_v32 = vpop.eup %3087 }
 0x5f1   : > { %v1211_v34 = vmul.f32 %v3088_v32, %v3490_v59 }
 0x5f2   : > { %v1192_v35 = vpop.xlane.xlu1 %1191  ;;  %v1189_v36 = vpop.xlane.xlu0 %1188 }
 0x5f3   : > { %v1218_v37 = vpack.c.bf16 %v1211_v34, %v1210_v33  ;;  %3091 = vrcp.f32 %v1189_v36 }
 0x5f4   : > { %3093 = vrcp.f32 %v1192_v35 }
 0x5f5   : > { %2859 = vmatmul.mubr.msk.bf16.vlgmr.msra.gmra.mrb[24].mxu0 %vm637_vm3, %v1218_v37 }
 0x5f6   : > { %2869 = vmatpush3.bf16.msra.mxu0 %v1317_v22  ;;  %2870 = vmatprep.mubr.msk.bf16.mxu0 %vm3209_vm1, %v3208_v6  ;;  %v1198_v38 = vpop.xlane.xlu1 %1197 }
 0x5f7   : > { %v1195_v39 = vpop.xlane.xlu0 %1194  ;;  %2880 = vmatprep.subr.bf16.mxu0 %v3208_v6 }
 0x5f8   : > { %3095 = vrcp.f32 %v1195_v39 }
 0x5f9   : > { %3097 = vrcp.f32 %v1198_v38  ;;  %v3090_v41 = vpop.eup %3089  ;;  %v412_v38 = vld [vmem:[#allocation3 + $0x60] sm:$0xff] }
 0x5fa   : > { %v1212_v43 = vmul.f32 %v3090_v41, %v3074_v8  ;;  %v1489_v52 = vpop.permute.xlu1 %1488  ;;  %v413_v41 = vld [vmem:[#allocation3 + $0x68] sm:$0xff] }
 0x5fb   : > { %v1201_v40 = vpop.xlane.xlu0 %1200  ;;  %v1494_v61 = vsel %vm439_vm2, %v1489_v52, 0  ;;  %v421_v52 = vld [vmem:[#allocation3 + $0xa8] sm:$0xff] }
 0x5fc   : > { %3099 = vrcp.f32 %v1201_v40 }
 0x5fd   : > { %v3092_v42 = vpop.eup %3091 }
 0x5fe   : > { %v1213_v44 = vmul.f32 %v3092_v42, %v3078_v13  ;;  %v3094_v45 = vpop.eup %3093  ;;  %v1540_v60 = vpop.permute.xlu1 %1539 }
 0x5ff   : > { %v1214_v48 = vmul.f32 %v3094_v45, %v3496_v12  ;;  %v1438_v51 = vpop.permute.xlu0 %1437  ;;  %v1545_v62 = vsel %vm439_vm2, %v1540_v60, 0  ;;  %v429_v60 = vld [vmem:[#allocation3 + $0xe8] sm:$0xff] }
 0x600   : > { %v1219_v46 = vpack.c.bf16 %v1213_v44, %v1212_v43  ;;  %v1443_v57 = vsel %vm439_vm2, %v1438_v51, 0  ;;  %v420_v44 = vld [vmem:[#allocation3 + $0xa0] sm:$0xff] }
 0x602   : > { %v3096_v47 = vpop.eup %3095  ;;  %2865 = vmatmul.mubr.msk.bf16.vlgmr.msra.gmra.mrb[32].mxu1 %vm637_vm3, %v1219_v46  ;;  %v1591_v0 = vpop.permute.xlu1 %1590 }
 0x603   : > { %v1215_v49 = vmul.f32 %v3096_v47, %v3082_v17  ;;  %v3098_v50 = vpop.eup %3097  ;;  %2875 = vmatpush3.bf16.msra.mxu1 %v1364_v23  ;;  %2876 = vmatprep.mubr.msk.bf16.mxu1 %vm3209_vm1, %v3208_v6  ;;  %v1436_v59 = vpop.permute.xlu0 %1435  ;;  %v1596_v1 = vsel %vm439_vm2, %v1591_v0, 0  ;;  %v404_v23 = vld [vmem:[#allocation3 + $0x20] sm:$0xff] }
 0x604   : > { %2886 = vmatprep.subr.bf16.mxu1 %v3208_v6  ;;  %v1216_v55 = vmul.f32 %v3098_v50, %v3502_v16 }
 0x605   : > { %v1220_v53 = vpack.c.bf16 %v1215_v49, %v1214_v48 }
 0x606   : > { %v3100_v54 = vpop.eup %3099  ;;  %v1589_v3 = vpop.permute.xlu1 %1588 }
 0x607   : > { %v1217_v56 = vmul.f32 %v3100_v54, %v3084_v20  ;;  %2871 = vmatmul.mubr.msk.bf16.vlgmr.msra.gmra.mrb[28].mxu0 %vm637_vm3, %v1220_v53  ;;  %v1487_v63 = vpop.permute.xlu0 %1486 }
 0x608   : > { %2881 = vmatpush3.bf16.xpose.msra.mxu0 %v1443_v57  ;;  %2882 = vmatprep.mubr.msk.bf16.mxu0 %vm3209_vm1, %v3208_v6 }
 0x609   : > { %v1221_v58 = vpack.c.bf16 %v1217_v56, %v1216_v55  ;;  %2892 = vmatprep.subr.bf16.mxu0 %v3208_v6  ;;  %v428_v55 = vld [vmem:[#allocation3 + $0xe0] sm:$0xff] }
 0x60b   : > { %2877 = vmatmul.mubr.msk.bf16.vlgmr.msra.gmra.mrb[36].mxu1 %vm637_vm3, %v1221_v58  ;;  %v1538_v2 = vpop.permute.xlu0 %1537 }
 0x60c   : > { %2888 = vmatprep.mubr.msk.bf16.mxu1 %vm3209_vm1, %v3208_v6  ;;  %2887 = vmatpush3.bf16.xpose.msra.mxu1 %v1494_v61 }
 0x60d   : > { %2898 = vmatprep.subr.bf16.mxu1 %v3208_v6 }
 0x60f   : > { %2883 = vmatmul.mubr.msk.bf16.vlgmr.msra.gmra.mrb[32].mxu0 %vm439_vm2, %v1436_v59 }
 0x610   : > { %2893 = vmatpush3.bf16.xpose.msra.mxu0 %v1545_v62  ;;  %2894 = vmatprep.mubr.msk.bf16.mxu0 %vm3209_vm1, %v3208_v6 }
 0x611   : > { %2904 = vmatprep.subr.bf16.mxu0 %v3208_v6 }
 0x613   : > { %2889 = vmatmul.mubr.msk.bf16.vlgmr.msra.gmra.mrb[40].mxu1 %vm439_vm2, %v1487_v63 }
 0x614   : > { %2899 = vmatpush3.bf16.xpose.msra.mxu1 %v1596_v1  ;;  %2900 = vmatprep.mubr.msk.bf16.mxu1 %vm3209_vm1, %v3208_v6 }
 0x615   : > { %2910 = vmatprep.subr.bf16.mxu1 %v3208_v6 }
 0x617   : > { %2895 = vmatmul.mubr.msk.bf16.vlgmr.msra.gmra.mrb[36].mxu0 %vm439_vm2, %v1538_v2 }
 0x618   : > { %2906 = vmatprep.mubr.msk.bf16.mxu0 %vm3209_vm1, %v3208_v6 }
 0x61b   : > { %2901 = vmatmul.mubr.msk.bf16.vlgmr.msra.gmra.mrb[44].mxu1 %vm439_vm2, %v1589_v3 }
 0x61c   : > { %2912 = vmatprep.mubr.msk.bf16.mxu1 %vm3209_vm1, %v3208_v6 }
 0x6c8   : > { %v3554_v4 = vpop.f32.mrb[24].mxu0 }
 0x6c9   : > { %v2860_v5 = vpop.f32.mrb[25].mxu0 }
 0x6ca   : > { %v3556_v7 = vpop.f32.mrb[26].mxu0 }
 0x6cb   : > { %v1410_v8 = vpack.c.bf16 %v3556_v7, %v3554_v4  ;;  %v2861_v9 = vpop.f32.mrb[27].mxu0 }
 0x6d5   : > { %v3560_v10 = vpop.f32.mrb[32].mxu1 }
 0x6d6   : > { %v2866_v11 = vpop.f32.mrb[33].mxu1 }
 0x6d7   : > { %v3562_v12 = vpop.f32.mrb[34].mxu1 }
 0x6d8   : > { %v1411_v13 = vpack.c.bf16 %v3562_v12, %v3560_v10  ;;  %v2867_v14 = vpop.f32.mrb[35].mxu1 }
 0x6da   : > { %v3566_v15 = vpop.f32.mrb[28].mxu0 }
 0x6db   : > { %v2872_v16 = vpop.f32.mrb[29].mxu0 }
 0x6dc   : > { %v3568_v17 = vpop.f32.mrb[30].mxu0 }
 0x6dd   : > { %v1412_v18 = vpack.c.bf16 %v3568_v17, %v3566_v15  ;;  %v2873_v19 = vpop.f32.mrb[31].mxu0 }
 0x6de   : > { %v3572_v20 = vpop.f32.mrb[36].mxu1 }
 0x6df   : > { %v2878_v21 = vpop.f32.mrb[37].mxu1 }
 0x6e0   : > { %v3574_v22 = vpop.f32.mrb[38].mxu1 }
 0x6e1   : > { %v1413_v28 = vpack.c.bf16 %v3574_v22, %v3572_v20  ;;  %v2879_v29 = vpop.f32.mrb[39].mxu1 }
 0x6e2   : > { %v1479_v30 = vpop.f32.mrb[32].mxu0 }
 0x6e3   : > { %v1480_v32 = vadd.f32 %v1479_v30, %v404_v23  ;;  %v2884_v33 = vpop.f32.mrb[33].mxu0 }
 0x6e4   : > { %v1482_v34 = vpop.f32.mrb[34].mxu0 }
 0x6e5   : > { %v1483_v35 = vadd.f32 %v1482_v34, %v405_v31  ;;  %v2885_v36 = vpop.f32.mrb[35].mxu0  ;;  %v1639_v37 = vsel %vm637_vm3, %v1480_v32, -inf }
 0x6e6   : > { %1640 = vmax.xlane.f32.xlu0 %v1639_v37  ;;  %v1530_v39 = vpop.f32.mrb[40].mxu1 }
 0x6e7   : > { %v1642_v40 = vsel %vm637_vm3, %v1483_v35, -inf  ;;  %v1531_v42 = vadd.f32 %v1530_v39, %v412_v38  ;;  %v2890_v43 = vpop.f32.mrb[41].mxu1 }
 0x6e8   : > { %1643 = vmax.xlane.f32.xlu1 %v1642_v40  ;;  %v1533_v45 = vpop.f32.mrb[42].mxu1 }
 0x6e9   : > { %v1534_v46 = vadd.f32 %v1533_v45, %v413_v41  ;;  %v2891_v47 = vpop.f32.mrb[43].mxu1  ;;  %v1645_v48 = vsel %vm637_vm3, %v1531_v42, -inf }
 0x6ea   : > { %v1581_v49 = vpop.f32.mrb[36].mxu0  ;;  %1646 = vmax.xlane.f32.xlu0 %v1645_v48 }
 0x6eb   : > { %v1582_v50 = vadd.f32 %v1581_v49, %v420_v44  ;;  %v2896_v51 = vpop.f32.mrb[37].mxu0  ;;  %v1648_v58 = vsel %vm637_vm3, %v1534_v46, -inf }
 0x6ec   : > { %v1584_v53 = vpop.f32.mrb[38].mxu0 }
 0x6ed   : > { %v2897_v54 = vpop.f32.mrb[39].mxu0  ;;  %v1651_v56 = vsel %vm637_vm3, %v1582_v50, -inf  ;;  %v1585_v57 = vadd.f32 %v1584_v53, %v421_v52 }
 0x6ee   : > { %1652 = vmax.xlane.f32.xlu1 %v1651_v56  ;;  %1649 = vmax.xlane.f32.xlu0 %v1648_v58  ;;  %v1632_v59 = vpop.f32.mrb[44].mxu1 }
 0x6ef   : > { %v1633_v61 = vadd.f32 %v1632_v59, %v428_v55  ;;  %v2902_v62 = vpop.f32.mrb[45].mxu1  ;;  %v1654_v3 = vsel %vm637_vm3, %v1585_v57, -inf }
 0x6f0   : > { %v1635_v63 = vpop.f32.mrb[46].mxu1 }
 0x6f1   : > { %v1636_v0 = vadd.f32 %v1635_v63, %v429_v60  ;;  %v2903_v1 = vpop.f32.mrb[47].mxu1  ;;  %v1657_v2 = vsel %vm637_vm3, %v1633_v61, -inf }
 0x6f2   : > { %1658 = vmax.xlane.f32.xlu1 %v1657_v2  ;;  %1655 = vmax.xlane.f32.xlu0 %v1654_v3 }
 0x6f3   : > { %v1660_v5 = vsel %vm637_vm3, %v1636_v0, -inf }
 0x6f6   : > { %1661 = vmax.xlane.f32.xlu0 %v1660_v5 }
 0x703   : > { %1731 = vrot.lane.b32.xlu1 %v3338_v26, %s3217_s11 }
 0x707   : > { %1825 = vrot.lane.b32.xlu1 %v3340_v27, %s3217_s11 }
 0x70b   : > { %1872 = vrot.lane.b32.xlu1 %v3336_v25, %s3217_s11 }
 0x70c   : > { %1778 = vrot.lane.b32.xlu0 %v3334_v24, %s3217_s11 }
 0x773   : > { %v1641_v9 = vpop.xlane.xlu0 %1640 }
 0x774   : > { %v1663_v11 = vsub.f32 %v1480_v32, %v1641_v9 }
 0x775   : > { %v1644_v14 = vpop.xlane.xlu1 %1643 }
 0x776   : > { %v1671_v16 = vmul.f32 1.442695, %v1663_v11  ;;  %v1664_v19 = vsub.f32 %v1483_v35, %v1644_v14 }
 0x777   : > { %v1647_v23 = vpop.xlane.xlu0 %1646 }
 0x778   : > { %3101 = vpow2.f32 %v1671_v16  ;;  %v1673_v21 = vmul.f32 1.442695, %v1664_v19  ;;  %v1665_v29 = vsub.f32 %v1531_v42, %v1647_v23 }
 0x77a   : > { %3103 = vpow2.f32 %v1673_v21  ;;  %v1675_v30 = vmul.f32 1.442695, %v1665_v29 }
 0x77b   : > { %v1653_v31 = vpop.xlane.xlu1 %1652  ;;  %v1650_v34 = vpop.xlane.xlu0 %1649 }
 0x77c   : > { %v1667_v33 = vsub.f32 %v1582_v50, %v1653_v31  ;;  %3105 = vpow2.f32 %v1675_v30  ;;  %v1666_v36 = vsub.f32 %v1534_v46, %v1650_v34 }
 0x77e   : > { %v1679_v37 = vmul.f32 1.442695, %v1667_v33  ;;  %v1677_v38 = vmul.f32 1.442695, %v1666_v36 }
 0x77f   : > { %v1659_v39 = vpop.xlane.xlu1 %1658  ;;  %v1656_v40 = vpop.xlane.xlu0 %1655 }
 0x780   : > { %3107 = vpow2.f32 %v1679_v37  ;;  %v1669_v32 = vsub.f32 %v1633_v61, %v1659_v39  ;;  %v1668_v41 = vsub.f32 %v1585_v57, %v1656_v40 }
 0x781   : > { %3109 = vpow2.f32 %v1677_v38 }
 0x782   : > { %v3102_v35 = vpop.eup %3101  ;;  %v1683_v43 = vmul.f32 1.442695, %v1669_v32  ;;  %v1681_v44 = vmul.f32 1.442695, %v1668_v41 }
 0x783   : > { %v1687_v42 = vsel %vm637_vm3, %v3102_v35, 0.0  ;;  %v1732_v47 = vpop.permute.xlu1 %1731  ;;  %v1662_v48 = vpop.xlane.xlu0 %1661 }
 0x784   : > { %v3104_v45 = vpop.eup %3103  ;;  %1688 = vadd.xlane.f32.xlu1 %v1687_v42  ;;  %3111 = vpow2.f32 %v1683_v43  ;;  %v1670_v49 = vsub.f32 %v1636_v0, %v1662_v48  ;;  %2905 = vmatpush3.bf16.msra.mxu0 %v1732_v47 }
 0x785   : > { %v1690_v46 = vsel %vm637_vm3, %v3104_v45, 0.0  ;;  %3113 = vpow2.f32 %v1681_v44  ;;  %2916 = vmatprep.subr.bf16.mxu0 %v3208_v6 }
 0x786   : > { %1691 = vadd.xlane.f32.xlu0 %v1690_v46  ;;  %v3106_v50 = vpop.eup %3105  ;;  %v1685_v51 = vmul.f32 1.442695, %v1670_v49 }
 0x787   : > { %v1779_v52 = vpop.permute.xlu0 %1778  ;;  %v1693_v53 = vsel %vm637_vm3, %v3106_v50, 0.0  ;;  %v1826_v0 = vpop.permute.xlu1 %1825 }
 0x788   : > { %3115 = vpow2.f32 %v1685_v51  ;;  %1694 = vadd.xlane.f32.xlu1 %v1693_v53  ;;  %2911 = vmatpush3.bf16.msra.mxu1 %v1779_v52 }
 0x789   : > { %2922 = vmatprep.subr.bf16.mxu1 %v3208_v6 }
 0x78a   : > { %v3108_v54 = vpop.eup %3107 }
 0x78b   : > { %v3110_v55 = vpop.eup %3109  ;;  %v1699_v56 = vsel %vm637_vm3, %v3108_v54, 0.0  ;;  %v1873_v1 = vpop.permute.xlu1 %1872 }
 0x78c   : > { %v1696_v57 = vsel %vm637_vm3, %v3110_v55, 0.0  ;;  %1700 = vadd.xlane.f32.xlu1 %v1699_v56 }
 0x78d   : > { %1697 = vadd.xlane.f32.xlu0 %v1696_v57 }
 0x78e   : > { %v3597_v58 = vpop.eup %3111 }
 0x78f   : > { %v3114_v59 = vpop.eup %3113  ;;  %v1705_v60 = vsel %vm637_vm3, %v3597_v58, 0.0 }
 0x790   : > { %1706 = vadd.xlane.f32.xlu1 %v1705_v60  ;;  %v1702_v61 = vsel %vm637_vm3, %v3114_v59, 0.0 }
 0x791   : > { %1703 = vadd.xlane.f32.xlu0 %v1702_v61 }
 0x792   : > { %v3116_v62 = vpop.eup %3115 }
 0x793   : > { %v1708_v63 = vsel %vm637_vm3, %v3116_v62, 0.0 }
 0x795   : > { %1709 = vadd.xlane.f32.xlu0 %v1708_v63 }
 0x7a1   : > { %1997 = vrot.lane.b32.xlu1 %v3334_v24, %s3218_s12 }
 0x7a5   : > { %2048 = vrot.lane.b32.xlu1 %v3340_v27, %s3218_s12 }
 0x7a9   : > { %2099 = vrot.lane.b32.xlu1 %v3336_v25, %s3218_s12 }
 0x7ab   : > { %1946 = vrot.lane.b32.xlu0 %v3338_v26, %s3218_s12 }
 0x7ad   : > { %2097 = vrot.lane.b32.xlu1 %v3336_v25, %s3219_s13 }
 0x7af   : > { %1944 = vrot.lane.b32.xlu0 %v3338_v26, %s3219_s13 }
 0x7b3   : > { %1995 = vrot.lane.b32.xlu0 %v3334_v24, %s3219_s13 }
 0x7b7   : > { %2046 = vrot.lane.b32.xlu0 %v3340_v27, %s3219_s13 }
 0x811   : > { %v1689_v2 = vpop.xlane.xlu1 %1688 }
 0x812   : > { %3117 = vrcp.f32 %v1689_v2 }
 0x813   : > { %v1692_v3 = vpop.xlane.xlu0 %1691 }
 0x814   : > { %3119 = vrcp.f32 %v1692_v3 }
 0x815   : > { %v1695_v5 = vpop.xlane.xlu1 %1694 }
 0x816   : > { %3121 = vrcp.f32 %v1695_v5 }
 0x819   : > { %v1701_v9 = vpop.xlane.xlu1 %1700 }
 0x81a   : > { %v1698_v11 = vpop.xlane.xlu0 %1697 }
 0x81b   : > { %3123 = vrcp.f32 %v1698_v11 }
 0x81c   : > { %v3118_v14 = vpop.eup %3117  ;;  %3125 = vrcp.f32 %v1701_v9 }
 0x81d   : > { %v1719_v19 = vmul.f32 %v3118_v14, %v3102_v35  ;;  %v1707_v23 = vpop.xlane.xlu1 %1706 }
 0x81e   : > { %v3120_v16 = vpop.eup %3119  ;;  %v1704_v29 = vpop.xlane.xlu0 %1703 }
 0x81f   : > { %v1720_v21 = vmul.f32 %v3120_v16, %v3104_v45  ;;  %3127 = vrcp.f32 %v1704_v29 }
 0x820   : > { %3129 = vrcp.f32 %v1707_v23  ;;  %v3122_v33 = vpop.eup %3121 }
 0x821   : > { %v1727_v30 = vpack.c.bf16 %v1720_v21, %v1719_v19  ;;  %v1721_v36 = vmul.f32 %v3122_v33, %v3106_v50  ;;  %v1998_v44 = vpop.permute.xlu1 %1997 }
 0x822   : > { %v1710_v31 = vpop.xlane.xlu0 %1709  ;;  %v2003_v52 = vsel %vm439_vm2, %v1998_v44, 0 }
 0x823   : > { %2907 = vmatmul.mubr.msk.bf16.vlgmr.msra.gmra.mrb[40].mxu0 %vm637_vm3, %v1727_v30  ;;  %3131 = vrcp.f32 %v1710_v31  ;;  %v406_v30 = vld [vmem:[#allocation3 + $0x30] sm:$0xff] }
 0x824   : > { %2917 = vmatpush3.bf16.msra.mxu0 %v1826_v0  ;;  %2918 = vmatprep.mubr.msk.bf16.mxu0 %vm3209_vm1, %v3208_v6 }
 0x825   : > { %2928 = vmatprep.subr.bf16.mxu0 %v3208_v6  ;;  %v3124_v34 = vpop.eup %3123  ;;  %v2049_v51 = vpop.permute.xlu1 %2048 }
 0x826   : > { %v1722_v37 = vmul.f32 %v3124_v34, %v3110_v55  ;;  %v3126_v38 = vpop.eup %3125  ;;  %v1947_v43 = vpop.permute.xlu0 %1946  ;;  %v2054_v53 = vsel %vm439_vm2, %v2049_v51, 0 }
 0x827   : > { %v1723_v32 = vmul.f32 %v3126_v38, %v3108_v54  ;;  %v1952_v49 = vsel %vm439_vm2, %v1947_v43, 0 }
 0x828   : > { %v1728_v39 = vpack.c.bf16 %v1722_v37, %v1721_v36  ;;  %v407_v36 = vld [vmem:[#allocation3 + $0x38] sm:$0xff] }
 0x829   : > { %v3128_v40 = vpop.eup %3127  ;;  %v2100_v55 = vpop.permute.xlu1 %2099 }
 0x82a   : > { %v1724_v41 = vmul.f32 %v3128_v40, %v3114_v59  ;;  %2913 = vmatmul.mubr.msk.bf16.vlgmr.msra.gmra.mrb[48].mxu1 %vm637_vm3, %v1728_v39  ;;  %v3130_v35 = vpop.eup %3129  ;;  %v1945_v50 = vpop.permute.xlu0 %1944  ;;  %v2105_v56 = vsel %vm439_vm2, %v2100_v55, 0  ;;  %v423_v55 = vld [vmem:[#allocation3 + $0xb8] sm:$0xff] }
 0x82b   : > { %2923 = vmatpush3.bf16.msra.mxu1 %v1873_v1  ;;  %2924 = vmatprep.mubr.msk.bf16.mxu1 %vm3209_vm1, %v3208_v6  ;;  %v1725_v47 = vmul.f32 %v3130_v35, %v3597_v58  ;;  %v414_v35 = vld [vmem:[#allocation3 + $0x70] sm:$0xff] }
 0x82c   : > { %v1729_v42 = vpack.c.bf16 %v1724_v41, %v1723_v32  ;;  %2934 = vmatprep.subr.bf16.mxu1 %v3208_v6 }
 0x82d   : > { %v3132_v45 = vpop.eup %3131  ;;  %v2098_v58 = vpop.permute.xlu1 %2097 }
 0x82e   : > { %v1726_v48 = vmul.f32 %v3132_v45, %v3116_v62  ;;  %2919 = vmatmul.mubr.msk.bf16.vlgmr.msra.gmra.mrb[44].mxu0 %vm637_vm3, %v1729_v42  ;;  %v1996_v54 = vpop.permute.xlu0 %1995  ;;  %v415_v42 = vld [vmem:[#allocation3 + $0x78] sm:$0xff] }
 0x82f   : > { %2929 = vmatpush3.bf16.xpose.msra.mxu0 %v1952_v49  ;;  %2930 = vmatprep.mubr.msk.bf16.mxu0 %vm3209_vm1, %v3208_v6 }
 0x830   : > { %v1730_v46 = vpack.c.bf16 %v1726_v48, %v1725_v47  ;;  %2940 = vmatprep.subr.bf16.mxu0 %v3208_v6  ;;  %v422_v48 = vld [vmem:[#allocation3 + $0xb0] sm:$0xff] }
 0x832   : > { %2925 = vmatmul.mubr.msk.bf16.vlgmr.msra.gmra.mrb[52].mxu1 %vm637_vm3, %v1730_v46  ;;  %v2047_v57 = vpop.permute.xlu0 %2046 }
 0x833   : > { %2936 = vmatprep.mubr.msk.bf16.mxu1 %vm3209_vm1, %v3208_v6 }
 0x834   : > { %2935 = vmatpush3.bf16.xpose.msra.mxu1 %v2003_v52 }
 0x835   : > { %2946 = vmatprep.subr.bf16.mxu1 %v3208_v6 }
 0x836   : > { %2931 = vmatmul.mubr.msk.bf16.vlgmr.msra.gmra.mrb[48].mxu0 %vm439_vm2, %v1945_v50 }
 0x837   : > { %2941 = vmatpush3.bf16.xpose.msra.mxu0 %v2054_v53  ;;  %2942 = vmatprep.mubr.msk.bf16.mxu0 %vm3209_vm1, %v3208_v6 }
 0x838   : > { %2952 = vmatprep.subr.bf16.mxu0 %v3208_v6 }
 0x83b   : > { %2937 = vmatmul.mubr.msk.bf16.vlgmr.msra.gmra.mrb[56].mxu1 %vm439_vm2, %v1996_v54 }
 0x83c   : > { %2947 = vmatpush3.bf16.xpose.msra.mxu1 %v2105_v56  ;;  %2948 = vmatprep.mubr.msk.bf16.mxu1 %vm3209_vm1, %v3208_v6 }
 0x83d   : > { %2958 = vmatprep.subr.bf16.mxu1 %v3208_v6 }
 0x83e   : > { %2943 = vmatmul.mubr.msk.bf16.vlgmr.msra.gmra.mrb[52].mxu0 %vm439_vm2, %v2047_v57 }
 0x83f   : > { %2954 = vmatprep.mubr.msk.bf16.mxu0 %vm3209_vm1, %v3208_v6 }
 0x843   : > { %2949 = vmatmul.mubr.msk.bf16.vlgmr.msra.gmra.mrb[60].mxu1 %vm439_vm2, %v2098_v58  ;;  %v430_v58 = vld [vmem:[#allocation3 + $0xf0] sm:$0xff] }
 0x844   : > { %2960 = vmatprep.mubr.msk.bf16.mxu1 %vm3209_vm1, %v3208_v6 }
 0x8f6   : > { %v3646_v59 = vpop.f32.mrb[40].mxu0 }
 0x8f7   : > { %v2908_v60 = vpop.f32.mrb[41].mxu0 }
 0x8f8   : > { %v3648_v61 = vpop.f32.mrb[42].mxu0 }
 0x8f9   : > { %v1919_v62 = vpack.c.bf16 %v3648_v61, %v3646_v59  ;;  %v2909_v63 = vpop.f32.mrb[43].mxu0 }
 0x8fd   : > { %v3652_v0 = vpop.f32.mrb[48].mxu1 }
 0x8fe   : > { %v2914_v1 = vpop.f32.mrb[49].mxu1 }
 0x8ff   : > { %v3654_v2 = vpop.f32.mrb[50].mxu1 }
 0x900   : > { %v1920_v3 = vpack.c.bf16 %v3654_v2, %v3652_v0  ;;  %v2915_v5 = vpop.f32.mrb[51].mxu1 }
 0x901   : > { %v3658_v9 = vpop.f32.mrb[44].mxu0 }
 0x902   : > { %v2920_v11 = vpop.f32.mrb[45].mxu0 }
 0x903   : > { %v3660_v14 = vpop.f32.mrb[46].mxu0  ;;  %v431_v11 = vld [vmem:[#allocation3 + $0xf8] sm:$0xff] }
 0x904   : > { %v1921_v16 = vpack.c.bf16 %v3660_v14, %v3658_v9  ;;  %v2921_v19 = vpop.f32.mrb[47].mxu0 }
 0x905   : > { %v3664_v21 = vpop.f32.mrb[52].mxu1 }
 0x906   : > { %v2926_v23 = vpop.f32.mrb[53].mxu1 }
 0x907   : > { %v3666_v29 = vpop.f32.mrb[54].mxu1 }
 0x908   : > { %v1922_v31 = vpack.c.bf16 %v3666_v29, %v3664_v21  ;;  %v2927_v33 = vpop.f32.mrb[55].mxu1 }
 0x909   : > { %v1988_v34 = vpop.f32.mrb[48].mxu0 }
 0x90a   : > { %v1989_v37 = vadd.f32 %v1988_v34, %v406_v30  ;;  %v2932_v38 = vpop.f32.mrb[49].mxu0 }
 0x90b   : > { %v1991_v39 = vpop.f32.mrb[50].mxu0 }
 0x90c   : > { %v1992_v40 = vadd.f32 %v1991_v39, %v407_v36  ;;  %v2933_v32 = vpop.f32.mrb[51].mxu0  ;;  %v2148_v41 = vsel %vm637_vm3, %v1989_v37, -inf }
 0x90d   : > { %2149 = vmax.xlane.f32.xlu0 %v2148_v41 }
 0x90e   : > { %v2039_v43 = vpop.f32.mrb[56].mxu1  ;;  %v2151_v44 = vsel %vm637_vm3, %v1992_v40, -inf }
 0x90f   : > { %v2040_v45 = vadd.f32 %v2039_v43, %v414_v35  ;;  %v2938_v47 = vpop.f32.mrb[57].mxu1  ;;  %2152 = vmax.xlane.f32.xlu1 %v2151_v44 }
 0x910   : > { %v2042_v49 = vpop.f32.mrb[58].mxu1 }
 0x911   : > { %v2043_v46 = vadd.f32 %v2042_v49, %v415_v42  ;;  %v2939_v50 = vpop.f32.mrb[59].mxu1  ;;  %v2154_v51 = vsel %vm637_vm3, %v2040_v45, -inf  ;;  %v2090_v52 = vpop.f32.mrb[52].mxu0 }
 0x912   : > { %2155 = vmax.xlane.f32.xlu0 %v2154_v51  ;;  %v2091_v53 = vadd.f32 %v2090_v52, %v422_v48  ;;  %v2944_v54 = vpop.f32.mrb[53].mxu0 }
 0x913   : > { %v2093_v56 = vpop.f32.mrb[54].mxu0  ;;  %v2157_v1 = vsel %vm637_vm3, %v2043_v46, -inf }
 0x914   : > { %v2945_v57 = vpop.f32.mrb[55].mxu0  ;;  %v2160_v60 = vsel %vm637_vm3, %v2091_v53, -inf  ;;  %v2094_v63 = vadd.f32 %v2093_v56, %v423_v55 }
 0x915   : > { %2161 = vmax.xlane.f32.xlu1 %v2160_v60 }
 0x916   : > { %2158 = vmax.xlane.f32.xlu0 %v2157_v1  ;;  %v2141_v5 = vpop.f32.mrb[60].mxu1  ;;  %v2163_v38 = vsel %vm637_vm3, %v2094_v63, -inf }
 0x917   : > { %v2142_v19 = vadd.f32 %v2141_v5, %v430_v58  ;;  %v2950_v23 = vpop.f32.mrb[61].mxu1 }
 0x918   : > { %v2144_v30 = vpop.f32.mrb[62].mxu1 }
 0x919   : > { %v2145_v33 = vadd.f32 %v2144_v30, %v431_v11  ;;  %v2951_v34 = vpop.f32.mrb[63].mxu1  ;;  %v2166_v36 = vsel %vm637_vm3, %v2142_v19, -inf }
 0x91a   : > { %2167 = vmax.xlane.f32.xlu1 %v2166_v36  ;;  %2164 = vmax.xlane.f32.xlu0 %v2163_v38 }
 0x91b   : > { %v2169_v39 = vsel %vm637_vm3, %v2145_v33, -inf }
 0x91e   : > { %2170 = vmax.xlane.f32.xlu0 %v2169_v39 }
 0x92b   : > { %2240 = vrot.lane.b32.xlu1 %v3338_v26, %s3220_s14 }
 0x99a   : > { %v2150_v32 = vpop.xlane.xlu0 %2149 }
 0x99b   : > { %v2172_v41 = vsub.f32 %v1989_v37, %v2150_v32 }
 0x99c   : > { %v2153_v35 = vpop.xlane.xlu1 %2152 }
 0x99d   : > { %v2180_v43 = vmul.f32 1.442695, %v2172_v41  ;;  %v2173_v44 = vsub.f32 %v1992_v40, %v2153_v35 }
 0x99f   : > { %3133 = vpow2.f32 %v2180_v43  ;;  %v2182_v42 = vmul.f32 1.442695, %v2173_v44  ;;  %v2156_v47 = vpop.xlane.xlu0 %2155 }
 0x9a0   : > { %v2174_v48 = vsub.f32 %v2040_v45, %v2156_v47 }
 0x9a1   : > { %3135 = vpow2.f32 %v2182_v42 }
 0x9a2   : > { %v2184_v49 = vmul.f32 1.442695, %v2174_v48  ;;  %v2162_v50 = vpop.xlane.xlu1 %2161 }
 0x9a3   : > { %v2176_v51 = vsub.f32 %v2091_v53, %v2162_v50  ;;  %v2159_v52 = vpop.xlane.xlu0 %2158 }
 0x9a4   : > { %3137 = vpow2.f32 %v2184_v49  ;;  %v2175_v54 = vsub.f32 %v2043_v46, %v2159_v52 }
 0x9a5   : > { %v2188_v55 = vmul.f32 1.442695, %v2176_v51 }
 0x9a6   : > { %v2186_v56 = vmul.f32 1.442695, %v2175_v54 }
 0x9a7   : > { %3139 = vpow2.f32 %v2188_v55  ;;  %v2168_v26 = vpop.xlane.xlu1 %2167  ;;  %v2165_v57 = vpop.xlane.xlu0 %2164 }
 0x9a8   : > { %3141 = vpow2.f32 %v2186_v56  ;;  %v2178_v37 = vsub.f32 %v2142_v19, %v2168_v26  ;;  %v2177_v58 = vsub.f32 %v2094_v63, %v2165_v57 }
 0x9a9   : > { %v3134_v40 = vpop.eup %3133 }
 0x9aa   : > { %v2192_v60 = vmul.f32 1.442695, %v2178_v37  ;;  %v2190_v1 = vmul.f32 1.442695, %v2177_v58  ;;  %v2196_v45 = vsel %vm637_vm3, %v3134_v40, 0.0 }
 0x9ab   : > { %v3136_v5 = vpop.eup %3135  ;;  %v2241_v11 = vpop.permute.xlu1 %2240  ;;  %2197 = vadd.xlane.f32.xlu1 %v2196_v45 }
 0x9ac   : > { %v2171_v23 = vpop.xlane.xlu0 %2170  ;;  %3143 = vpow2.f32 %v2192_v60  ;;  %2953 = vmatpush3.bf16.msra.mxu0 %v2241_v11  ;;  %v2199_v46 = vsel %vm637_vm3, %v3136_v5, 0.0  ;;  %v3035_v60 = vld [vmem:[%s3784_s4] sm:$0xff]   ;;  %v3036_v11 = vld [vmem:[%s3784_s4 + $0x8] sm:$0xff]  }
 0x9ad   : > { %v2179_v53 = vsub.f32 %v2145_v33, %v2171_v23  ;;  %3145 = vpow2.f32 %v2190_v1  ;;  %2200 = vadd.xlane.f32.xlu0 %v2199_v46  ;;  %2964 = vmatprep.subr.bf16.mxu0 %v3208_v6 }
 0x9ae   : > { %v3138_v19 = vpop.eup %3137 }
 0x9af   : > { %v2194_v63 = vmul.f32 1.442695, %v2179_v53  ;;  %v2202_v30 = vsel %vm637_vm3, %v3138_v19, 0.0 }
 0x9b0   : > { %2203 = vadd.xlane.f32.xlu1 %v2202_v30 }
 0x9b1   : > { %3147 = vpow2.f32 %v2194_v63  ;;  %v3684_v34 = vpop.eup %3139 }
 0x9b2   : > { %v3142_v36 = vpop.eup %3141  ;;  %v2208_v38 = vsel %vm637_vm3, %v3684_v34, 0.0 }
 0x9b3   : > { %v2205_v33 = vsel %vm637_vm3, %v3142_v36, 0.0 }
 0x9b4   : > { %2209 = vadd.xlane.f32.xlu1 %v2208_v38  ;;  %2206 = vadd.xlane.f32.xlu0 %v2205_v33 }
 0x9b6   : > { %v3689_v39 = vpop.eup %3143 }
 0x9b7   : > { %v3146_v32 = vpop.eup %3145  ;;  %v2214_v41 = vsel %vm637_vm3, %v3689_v39, 0.0 }
 0x9b8   : > { %2215 = vadd.xlane.f32.xlu1 %v2214_v41  ;;  %v2211_v35 = vsel %vm637_vm3, %v3146_v32, 0.0 }
 0x9b9   : > { %2212 = vadd.xlane.f32.xlu0 %v2211_v35 }
 0x9bb   : > { %v3694_v43 = vpop.eup %3147 }
 0x9bc   : > { %v2217_v44 = vsel %vm637_vm3, %v3694_v43, 0.0 }
 0x9bd   : > { %2218 = vadd.xlane.f32.xlu0 %v2217_v44 }
 0x9c9   : > { %2334 = vrot.lane.b32.xlu1 %v3340_v27, %s3220_s14 }
 0x9cd   : > { %2381 = vrot.lane.b32.xlu1 %v3336_v25, %s3220_s14 }
 0x9d1   : > { %1420 = vrot.lane.b32.xlu1 %v1411_v13, %s3221_s15 }
 0x9d3   : > { %2287 = vrot.lane.b32.xlu0 %v3334_v24, %s3220_s14 }
 0x9d5   : > { %1929 = vrot.lane.b32.xlu1 %v1920_v3, %s3222_s17 }
 0x9d7   : > { %1418 = vrot.lane.b32.xlu0 %v1410_v8, %s3221_s15 }
 0x9d9   : > { %1424 = vrot.lane.b32.xlu1 %v1413_v28, %s3221_s15 }
 0x9db   : > { %1927 = vrot.lane.b32.xlu0 %v1919_v62, %s3222_s17 }
 0x9df   : > { %1422 = vrot.lane.b32.xlu0 %v1412_v18, %s3221_s15 }
 0xa38   : > { %v2198_v24 = vpop.xlane.xlu1 %2197 }
 0xa39   : > { %3149 = vrcp.f32 %v2198_v24 }
 0xa3a   : > { %v2201_v25 = vpop.xlane.xlu0 %2200 }
 0xa3b   : > { %3151 = vrcp.f32 %v2201_v25 }
 0xa3d   : > { %v2204_v27 = vpop.xlane.xlu1 %2203 }
 0xa3e   : > { %3153 = vrcp.f32 %v2204_v27 }
 0xa41   : > { %v2210_v4 = vpop.xlane.xlu1 %2209  ;;  %v2207_v7 = vpop.xlane.xlu0 %2206 }
 0xa42   : > { %3155 = vrcp.f32 %v2207_v7 }
 0xa43   : > { %v3150_v8 = vpop.eup %3149  ;;  %3157 = vrcp.f32 %v2210_v4 }
 0xa44   : > { %v2228_v13 = vmul.f32 %v3150_v8, %v3134_v40  ;;  %v2687_v8 = vld [vmem:[%s3785_s5] ss:$0 sm:$0xff] }
 0xa45   : > { %v3152_v10 = vpop.eup %3151  ;;  %v2216_v12 = vpop.xlane.xlu1 %2215 }
 0xa46   : > { %v2229_v20 = vmul.f32 %v3152_v10, %v3136_v5  ;;  %v2213_v22 = vpop.xlane.xlu0 %2212 }
 0xa47   : > { %3159 = vrcp.f32 %v2213_v22 }
 0xa48   : > { %v2236_v28 = vpack.c.bf16 %v2229_v20, %v2228_v13  ;;  %3161 = vrcp.f32 %v2216_v12  ;;  %v3154_v18 = vpop.eup %3153 }
 0xa49   : > { %v2335_v15 = vpop.permute.xlu1 %2334  ;;  %v2230_v62 = vmul.f32 %v3154_v18, %v3138_v19 }
 0xa4a   : > { %v2219_v17 = vpop.xlane.xlu0 %2218  ;;  %2955 = vmatmul.mubr.msk.bf16.vlgmr.msra.gmra.mrb[56].mxu0 %vm637_vm3, %v2236_v28 }
 0xa4b   : > { %3163 = vrcp.f32 %v2219_v17  ;;  %2965 = vmatpush3.bf16.msra.mxu0 %v2335_v15  ;;  %2966 = vmatprep.mubr.msk.bf16.mxu0 %vm3209_vm1, %v3208_v6 }
 0xa4c   : > { %v3156_v59 = vpop.eup %3155  ;;  %2976 = vmatprep.subr.bf16.mxu0 %v3035_v60 }
 0xa4d   : > { %v2382_v61 = vpop.permute.xlu1 %2381  ;;  %v2231_v0 = vmul.f32 %v3156_v59, %v3142_v36  ;;  %v3158_v3 = vpop.eup %3157 }
 0xa4e   : > { %v2288_v2 = vpop.permute.xlu0 %2287  ;;  %v2232_v49 = vmul.f32 %v3158_v3, %v3684_v34 }
 0xa4f   : > { %2959 = vmatpush3.bf16.msra.mxu1 %v2288_v2  ;;  %v2237_v42 = vpack.c.bf16 %v2231_v0, %v2230_v62 }
 0xa50   : > { %2970 = vmatprep.subr.bf16.mxu1 %v3208_v6 }
 0xa51   : > { %v3160_v47 = vpop.eup %3159  ;;  %v1421_v48 = vpop.permute.xlu1 %1420 }
 0xa52   : > { %v2233_v50 = vmul.f32 %v3160_v47, %v3146_v32  ;;  %1432 = vst.msk [vmem:[#allocation2 + $0x8] sm:$0xff] %vm1430_vm4, %v1421_v48  ;;  %2961 = vmatmul.mubr.msk.bf16.vlgmr.msra.gmra.mrb[64].mxu1 %vm637_vm3, %v2237_v42  ;;  %v1419_v51 = vpop.permute.xlu0 %1418  ;;  %v3162_v52 = vpop.eup %3161 }
 0xa53   : > { %1431 = vst.msk [vmem:[#allocation2] sm:$0xff] %vm1430_vm4, %v1419_v51  ;;  %2971 = vmatpush3.bf16.msra.mxu1 %v2382_v61  ;;  %2972 = vmatprep.mubr.msk.bf16.mxu1 %vm3209_vm1, %v3208_v6  ;;  %v2234_v26 = vmul.f32 %v3162_v52, %v3689_v39 }
 0xa54   : > { %v2238_v54 = vpack.c.bf16 %v2233_v50, %v2232_v49 }
 0xa55   : > { %v3164_v55 = vpop.eup %3163  ;;  %v1930_v56 = vpop.permute.xlu1 %1929 }
 0xa56   : > { %v2235_v57 = vmul.f32 %v3164_v55, %v3694_v43  ;;  %1941 = vst.msk [vmem:[#allocation2 + $0x8] sm:$0xff] %vm1939_vm5, %v1930_v56  ;;  %2967 = vmatmul.mubr.msk.bf16.vlgmr.msra.gmra.mrb[60].mxu0 %vm637_vm3, %v2238_v54  ;;  %v1928_v37 = vpop.permute.xlu0 %1927 }
 0xa57   : > { %1940 = vst.msk [vmem:[#allocation2] sm:$0xff] %vm1939_vm5, %v1928_v37  ;;  %2977 = vmatpush3.bf16.msra.mxu0 %v3035_v60 }
 0xa58   : > { %v2239_v58 = vpack.c.bf16 %v2235_v57, %v2234_v26  ;;  %2978 = vmatprep.subr.bf16.mxu0 %v3036_v11 }
 0xa59   : > { %v1425_v40 = vpop.permute.xlu1 %1424 }
 0xa5a   : > { %1434 = vst.msk [vmem:[#allocation2 + $0x18] sm:$0xff] %vm1430_vm4, %v1425_v40  ;;  %2973 = vmatmul.mubr.msk.bf16.vlgmr.msra.gmra.mrb[68].mxu1 %vm637_vm3, %v2239_v58  ;;  %v1423_v6 = vpop.permute.xlu0 %1422 }
 0xa5b   : > { %1433 = vst.msk [vmem:[#allocation2 + $0x10] sm:$0xff] %vm1430_vm4, %v1423_v6  ;;  %2979 = vmatpush3.bf16.msra.mxu0 %v3036_v11 }
 0xb1d   : > { %v2280_v1 = vpop.f32.mrb[56].mxu0 }
 0xb1e   : > { %v2956_v45 = vpop.f32.mrb[57].mxu0 }
 0xb1f   : > { %v2283_v5 = vpop.f32.mrb[58].mxu0 }
 0xb20   : > { %v2428_v23 = vpack.c.bf16 %v2283_v5, %v2280_v1  ;;  %v2957_v53 = vpop.f32.mrb[59].mxu0 }
 0xb22   : > { %2436 = vrot.lane.b32.xlu0 %v2428_v23, %s3223_s24 }
 0xb25   : > { %v2327_v46 = vpop.f32.mrb[64].mxu1 }
 0xb26   : > { %v2962_v19 = vpop.f32.mrb[65].mxu1  ;;  %1931 = vrot.lane.b32.xlu0 %v1921_v16, %s3222_s17 }
 0xb27   : > { %v2330_v63 = vpop.f32.mrb[66].mxu1 }
 0xb28   : > { %v2429_v30 = vpack.c.bf16 %v2330_v63, %v2327_v46  ;;  %v2963_v34 = vpop.f32.mrb[67].mxu1 }
 0xb29   : > { %v2374_v36 = vpop.f32.mrb[60].mxu0 }
 0xb2a   : > { %v2968_v38 = vpop.f32.mrb[61].mxu0  ;;  %2438 = vrot.lane.b32.xlu1 %v2429_v30, %s3223_s24 }
 0xb2b   : > { %v2377_v33 = vpop.f32.mrb[62].mxu0 }
 0xb2c   : > { %v2430_v39 = vpack.c.bf16 %v2377_v33, %v2374_v36  ;;  %v2969_v32 = vpop.f32.mrb[63].mxu0 }
 0xb2d   : > { %v2421_v41 = vpop.f32.mrb[68].mxu1 }
 0xb2e   : > { %2440 = vrot.lane.b32.xlu0 %v2430_v39, %s3223_s24  ;;  %1933 = vrot.lane.b32.xlu1 %v1922_v31, %s3222_s17  ;;  %v2974_v35 = vpop.f32.mrb[69].mxu1 }
 0xb2f   : > { %v2424_v43 = vpop.f32.mrb[70].mxu1 }
 0xb30   : > { %v2431_v9 = vpack.c.bf16 %v2424_v43, %v2421_v41  ;;  %v2975_v14 = vpop.f32.mrb[71].mxu1 }
 0xb32   : > { %2442 = vrot.lane.b32.xlu1 %v2431_v9, %s3223_s24 }
 0xb94   : > { %v2437_v16 = vpop.permute.xlu0 %2436 }
 0xb95   : > { %2449 = vst.msk [vmem:[#allocation2] sm:$0xff] %vm2448_vm6, %v2437_v16 }
 0xb98   : > { %v1932_v44 = vpop.permute.xlu0 %1931 }
 0xb99   : > { %1942 = vst.msk [vmem:[#allocation2 + $0x10] sm:$0xff] %vm1939_vm5, %v1932_v44 }
 0xb9c   : > { %v2439_v24 = vpop.permute.xlu1 %2438  ;;  %v2453_v25 = vld [vmem:[#allocation2] sm:$0xff] }
 0xb9d   : > { %2450 = vst.msk [vmem:[#allocation2 + $0x8] sm:$0xff] %vm2448_vm6, %v2439_v24  ;;  %2980 = vmatprep.mubr.msk.bf16.mxu0 %vm322_vm0, %v2453_v25 }
 0xba0   : > { %v1934_v27 = vpop.permute.xlu1 %1933  ;;  %v2441_v21 = vpop.permute.xlu0 %2440 }
 0xba1   : > { %1943 = vst.msk [vmem:[#allocation2 + $0x18] sm:$0xff] %vm1939_vm5, %v1934_v27 }
 0xba2   : > { %2451 = vst.msk [vmem:[#allocation2 + $0x10] sm:$0xff] %vm2448_vm6, %v2441_v21 }
 0xba4   : > { %v2443_v29 = vpop.permute.xlu1 %2442  ;;  %v2454_v31 = vld [vmem:[#allocation2 + $0x8] sm:$0xff] }
 0xba5   : > { %2452 = vst.msk [vmem:[#allocation2 + $0x18] sm:$0xff] %vm2448_vm6, %v2443_v29  ;;  %2981 = vmatmul.mubr.msk.bf16.vlgmr.msra.gmra.mrb[64].mxu0 %vm322_vm0, %v2454_v31 }
 0xba9   : > { %v2455_v4 = vld [vmem:[#allocation2 + $0x10] sm:$0xff] }
 0xbaa   : > { %2984 = vmatprep.mubr.msk.bf16.mxu0 %vm322_vm0, %v2455_v4 }
 0xbac   : > { %v2456_v7 = vld [vmem:[#allocation2 + $0x18] sm:$0xff] }
 0xbad   : > { %2985 = vmatmul.mubr.msk.bf16.gmra.mrb[68].mxu0 %vm322_vm0, %v2456_v7 }
 0xc78   : > { %v2982_v10 = vpop.f32.mrb[64].mxu0 }
 0xc79   : > { %v2535_v12 = vadd.f32 %v2982_v10, %v2687_v8  ;;  %v2526_v13 = vpop.f32.mrb[65].mxu0 }
 0xc7a   : > { %v2527_v20 = vadd.f32 %v2687_v8, %v2526_v13  ;;  %v2983_v22 = vpop.f32.mrb[66].mxu0 }
 0xc7b   : > { %2559 = vst.msk [vmem:[%s268_s29 + $0x10] sm:$0xff] %vm322_vm0, %v2535_v12  ;;  %v2538_v28 = vadd.f32 %v2983_v22, %v2687_v8  ;;  %v2529_v15 = vpop.f32.mrb[67].mxu0 }
 0xc7c   : > { %2557 = vst.msk [vmem:[%s268_s29] sm:$0xff] %vm322_vm0, %v2527_v20  ;;  %v2530_v17 = vadd.f32 %v2687_v8, %v2529_v15 }
 0xc7d   : > { %2560 = vst.msk [vmem:[%s268_s29 + $0x18] sm:$0xff] %vm322_vm0, %v2538_v28 }
 0xc7e   : > { %2558 = vst.msk [vmem:[%s268_s29 + $0x8] sm:$0xff] %vm322_vm0, %v2530_v17 }
 0xc80   : > { %v2986_v18 = vpop.f32.mrb[68].mxu0 }
 0xc81   : > { %v2551_v59 = vadd.f32 %v2986_v18, %v2687_v8  ;;  %v2542_v61 = vpop.f32.mrb[69].mxu0 }
 0xc82   : > { %v2543_v62 = vadd.f32 %v2687_v8, %v2542_v61  ;;  %v2987_v0 = vpop.f32.mrb[70].mxu0 }
 0xc83   : > { %2563 = vst.msk [vmem:[%s268_s29 + $0x30] sm:$0xff] %vm322_vm0, %v2551_v59  ;;  %v2554_v2 = vadd.f32 %v2987_v0, %v2687_v8  ;;  %v2545_v3 = vpop.f32.mrb[71].mxu0 }
 0xc84   : > { %2561 = vst.msk [vmem:[%s268_s29 + $0x20] sm:$0xff] %vm322_vm0, %v2543_v62  ;;  %v2546_v42 = vadd.f32 %v2687_v8, %v2545_v3 }
 0xc85   : > { %2564 = vst.msk [vmem:[%s268_s29 + $0x38] sm:$0xff] %vm322_vm0, %v2554_v2 }
 0xc86   : > { %2562 = vst.msk [vmem:[%s268_s29 + $0x28] sm:$0xff] %vm322_vm0, %v2546_v42 }
 0xc87 PF: > { %s17_s21 = sadd.s32 1, %s3203_s21  }
 0xc88   : > { %p14_p3 = scmp.ge.s32.totalorder %s17_s21, 4  }
 0xc8a   :  { %16 = sbr.rel (!%p14_p3) target bundleno = 1 (0x1), region = 79 }
 0xc91   :  { %2587 = vsyncpa [#allocation4], 1 }
 0xc92   :  { %2589 = vsyncpa [#allocation4 + $0x1], 1 }

</bundles_post_ra>
